<compile_context>
chip_gen: v5e
topology: v5e:2x2
jax: 0.10.0
libtpu: 0.0.40
codegen_flags: <defaults>
</compile_context>

<pallas_src>
import functools
import math

import jax
import jax.numpy as jnp
from jax.experimental import pallas as pl
from jax.experimental.pallas import tpu as pltpu

# Conv hyper-parameters fixed by the torch module.
_K1, _S1 = 8, 4
_K2, _S2 = 4, 2
_K3, _S3 = 3, 1


# ----------------------------------------------------------------------------
# Fused Pallas kernel: conv1 -> conv2 -> conv3 -> fc1 -> fc2 (noise pre-folded)
# ----------------------------------------------------------------------------
def _noisy_dqn_kernel(xp_ref, w1_ref, b1_ref, w2_ref, b2_ref, w3_ref, b3_ref,
                      wt1_ref, bb1_ref, wt2_ref, bb2_ref, out_ref, *, dims):
    B = dims["B"]
    OH1, OW1 = dims["OH1"], dims["OW1"]
    OH2, OW2 = dims["OH2"], dims["OW2"]
    OH3, OW3 = dims["OH3"], dims["OW3"]
    C1 = w1_ref.shape[-1]
    C2 = w2_ref.shape[-1]
    C3 = w3_ref.shape[-1]

    def dot_bf16(a, w):                      # bf16 MXU matmul, f32 accumulation
        return jnp.dot(a.astype(jnp.bfloat16), w, preferred_element_type=jnp.float32)

    # -------- conv1: 8x8 / stride 4, ReLU --------
    # xp_ref layout: (b, hs, ws, (r*4+t)*C0+c) with input pixel (4*hs+r, 4*ws+t); all
    # 16 stride phases + channels of tap group (p, q) form one contiguous K=16*C0 slab.
    acc1 = None
    for p in range(_K1 // _S1):
        for q in range(_K1 // _S1):
            patch = xp_ref[:, p:p + OH1, q:q + OW1, :]           # (B,OH1,OW1,16*C0)
            d = dot_bf16(patch.reshape(B * OH1 * OW1, patch.shape[-1]), w1_ref[p, q])
            acc1 = d if acc1 is None else acc1 + d
    act1 = jnp.maximum(acc1 + b1_ref[...], 0.0)                  # rows (b, oh1, ow1)

    # Phase-fold conv1's output for conv2 (stride 2): lane dim becomes 4*C1 = 128.
    a1r = act1.reshape(B, OH1 // _S2, _S2, OW1 // _S2, _S2, C1)
    a1f = jnp.concatenate(
        [a1r[:, :, r, :, t, :] for r in range(_S2) for t in range(_S2)], axis=-1)

    # -------- conv2: 4x4 / stride 2, ReLU --------
    acc2 = None
    for p in range(_K2 // _S2):
        for q in range(_K2 // _S2):
            patch = a1f[:, p:p + OH2, q:q + OW2, :]              # (B,OH2,OW2,4*C1)
            d = dot_bf16(patch.reshape(B * OH2 * OW2, _S2 * _S2 * C1), w2_ref[p, q])
            acc2 = d if acc2 is None else acc2 + d
    act2 = jnp.maximum(acc2 + b2_ref[...], 0.0)
    a2 = act2.reshape(B, OH2, OW2, C2)

    # -------- conv3: 3x3 / stride 1, ReLU (width taps folded: K = 3*C2) --------
    acc3 = None
    for i in range(_K3):
        slab = jnp.concatenate(
            [a2[:, i:i + OH3, j:j + OW3, :] for j in range(_K3)], axis=-1)
        d = dot_bf16(slab.reshape(B * OH3 * OW3, _K3 * C2), w3_ref[i])
        acc3 = d if acc3 is None else acc3 + d
    act3 = jnp.maximum(acc3 + b3_ref[...], 0.0)                  # (B*OH3*OW3, C3)

    # -------- fc1: NoisyFactorizedLinear with noise folded into wt1/bb1, ReLU --------
    flat = act3.reshape(B, OH3 * OW3 * C3)                       # NHWC flatten order
    h = jnp.maximum(dot_bf16(flat, wt1_ref[...]) + bb1_ref[...], 0.0)

    # -------- fc2: NoisyFactorizedLinear (folded), lane-padded 128-wide output --------
    qv = dot_bf16(h, wt2_ref[...]) + bb2_ref[...]
    out_ref[...] = qv.astype(out_ref.dtype)


# ----------------------------------------------------------------------------
# Host-side packing (one-time per noise draw) + jitted forward wrapper
# ----------------------------------------------------------------------------
def _f_eps(e):
    return jnp.sign(e) * jnp.sqrt(jnp.abs(e))


def pack_inputs(params, eps, n_actions):
    """Fold factorized noise into effective weights/biases, fold conv stride phases /
    width taps into the contraction dim, cast weights to bf16, pad fc2 to 128 lanes."""
    bf16 = jnp.bfloat16
    row = lambda v: v.reshape(1, -1)

    def conv_phase_pack(w, s):
        # (Cout, Cin, 2s, 2s) -> (p, q, (r*s+t)*Cin + c, Cout) == (2, 2, s*s*Cin, Cout)
        cout, cin = w.shape[0], w.shape[1]
        t = jnp.transpose(w, (2, 3, 1, 0)).reshape(2, s, 2, s, cin, cout)
        t = jnp.transpose(t, (0, 2, 1, 3, 4, 5))
        return t.reshape(2, 2, s * s * cin, cout).astype(bf16)

    def conv_width_pack(w):
        # (Cout, Cin, KH, KW) -> (KH, KW*Cin, Cout)
        cout, cin, kh, kw = w.shape
        return jnp.transpose(w, (2, 3, 1, 0)).reshape(kh, kw * cin, cout).astype(bf16)

    def noisy_fold(p, e):
        fin = _f_eps(e["in"]).reshape(-1)                              # (in,)
        fout = _f_eps(e["out"]).reshape(-1)                            # (out,)
        w_eff = p["wT"] + p["swT"] * (fin[:, None] * fout[None, :])    # (in, out)
        b_eff = p["b"] + p["sb"] * fout                                # (out,)
        return w_eff, b_eff

    wt1, fb1 = noisy_fold(params["fc1"], eps["fc1"])
    wt2, fb2 = noisy_fold(params["fc2"], eps["fc2"])

    # fc1 rows: torch flatten order (c, oh, ow) -> kernel's NHWC order (oh, ow, c)
    c3_out = params["c3_w"].shape[0]
    conv_out = wt1.shape[0]
    spatial = conv_out // c3_out
    wt1 = wt1.reshape(c3_out, spatial, -1).transpose(1, 0, 2).reshape(conv_out, -1)

    # Zero-pad fc2 output lanes AFTER the noise fold so padded columns stay exact zeros.
    n_pad = -(-n_actions // 128) * 128
    wt2 = jnp.pad(wt2, ((0, 0), (0, n_pad - n_actions)))
    fb2 = jnp.pad(fb2, ((0, n_pad - n_actions),))

    return dict(
        w1=conv_phase_pack(params["c1_w"], _S1), b1=row(params["c1_b"]),
        w2=conv_phase_pack(params["c2_w"], _S2), b2=row(params["c2_b"]),
        w3=conv_width_pack(params["c3_w"]), b3=row(params["c3_b"]),
        wt1=wt1.astype(bf16), bb1=row(fb1),
        wt2=wt2.astype(bf16), bb2=row(fb2))


def _pick_batch_block(b):
    for cand in (64, 32, 16, 8):
        if b % cand == 0:
            return cand
    return b                      # tiny / ragged batches: single block


def _vmem_limit_bytes(weights, xp, b_blk, n_pad, dims):
    wbytes = sum(math.prod(a.shape) * a.dtype.itemsize for a in weights)
    xbytes = b_blk * math.prod(xp.shape[1:]) * xp.dtype.itemsize
    obytes = b_blk * n_pad * 4
    # f32 activations (lane-padded to 128) + phase-fold / concat copies, with headroom.
    abytes = 4 * b_blk * (2 * dims["OH1"] * dims["OW1"] * 128
                          + 4 * dims["OH2"] * dims["OW2"] * 256
                          + dims["OH3"] * dims["OW3"] * 128 + 512 + n_pad)
    est = 2 * wbytes + 2 * (xbytes + obytes) + 3 * abytes + (4 << 20)
    # >= 32 MiB (above v5e's 16 MiB default), <= 48 MiB (headroom under v7x's 64 MiB).
    return int(min(max(est, 32 << 20), 48 << 20))


@functools.partial(jax.jit, static_argnames=("n_actions",))
def noisy_dqn_forward(packed, x, *, n_actions):
    """x: (B, C, H, W) NCHW float32, like the torch module."""
    B, C, H, W = x.shape
    if H % _S1 or W % _S1:
        raise ValueError("spatial size must be divisible by conv1 stride (4)")
    OH1, OW1 = (H - _K1) // _S1 + 1, (W - _K1) // _S1 + 1
    if OH1 % _S2 or OW1 % _S2:
        raise ValueError("conv1 output must be divisible by conv2 stride (2)")
    OH2, OW2 = (OH1 - _K2) // _S2 + 1, (OW1 - _K2) // _S2 + 1
    OH3, OW3 = OH2 - _K3 + 1, OW2 - _K3 + 1
    assert OH3 >= 1 and OW3 >= 1

    # NCHW -> stride-phase-folded NHWC: pixel (4*hs+r, 4*ws+t), channel c lands at lane
    # (r*4+t)*C + c of xp[b, hs, ws, :]. One fused XLA transpose of the raw input.
    # TODO(synk): fold this repack into the kernel (relayout after DMA) to save the
    # extra HBM round-trip of the raw input at large batch.
    xp = (x.reshape(B, C, H // _S1, _S1, W // _S1, _S1)
           .transpose(0, 2, 4, 3, 5, 1)
           .reshape(B, H // _S1, W // _S1, _S1 * _S1 * C))

    n_pad = packed["wt2"].shape[1]
    b_blk = _pick_batch_block(B)
    dims = dict(B=b_blk, OH1=OH1, OW1=OW1, OH2=OH2, OW2=OW2, OH3=OH3, OW3=OW3)

    names = ("w1", "b1", "w2", "b2", "w3", "b3", "wt1", "bb1", "wt2", "bb2")
    weights = tuple(packed[k] for k in names)

    def const_spec(a):            # weights stay VMEM-resident across all grid steps
        return pl.BlockSpec(a.shape, lambda b, _nd=a.ndim: (0,) * _nd)

    qpad = pl.pallas_call(
        functools.partial(_noisy_dqn_kernel, dims=dims),
        out_shape=jax.ShapeDtypeStruct((B, n_pad), jnp.float32),
        grid=(B // b_blk,),
        in_specs=[pl.BlockSpec((b_blk,) + xp.shape[1:], lambda b: (b, 0, 0, 0))]
                 + [const_spec(a) for a in weights],
        out_specs=pl.BlockSpec((b_blk, n_pad), lambda b: (b, 0)),
        compiler_params=pltpu.CompilerParams(
            dimension_semantics=("parallel",),
            vmem_limit_bytes=_vmem_limit_bytes(weights, xp, b_blk, n_pad, dims)),
    )(xp, *weights)
    return qpad[:, :n_actions]


# ----------------------------------------------------------------------------
# Deterministic parameter / noise construction (torch-equivalent layouts)
# ----------------------------------------------------------------------------
def _uniform(key, shape, bound):
    return jax.random.uniform(key, shape, jnp.float32, -bound, bound)


def _conv_params(key, cout, cin, k):
    kw_, kb_ = jax.random.split(key)
    bound = 1.0 / (cin * k * k) ** 0.5
    return _uniform(kw_, (cout, cin, k, k), bound), _uniform(kb_, (cout,), bound)


def _noisy_params(key, in_f, out_f, sigma_zero=0.4):
    kw_, kb_ = jax.random.split(key)
    bound = 1.0 / in_f ** 0.5
    sigma_init = sigma_zero / in_f ** 0.5
    return {
        "wT": _uniform(kw_, (out_f, in_f), bound).T,          # stored (in, out)
        "swT": jnp.full((in_f, out_f), sigma_init, jnp.float32),
        "b": _uniform(kb_, (out_f,), bound),
        "sb": jnp.full((out_f,), sigma_init, jnp.float32),
    }


def init_all(key, in_channels, hw, n_actions):
    k1, k2, k3, k4, k5, ke1, ke2, ke3, ke4 = jax.random.split(key, 9)
    s = hw
    s = (s - _K1) // _S1 + 1
    s = (s - _K2) // _S2 + 1
    s = (s - _K3) // _S3 + 1
    conv_out = 64 * s * s
    c1_w, c1_b = _conv_params(k1, 32, in_channels, _K1)
    c2_w, c2_b = _conv_params(k2, 64, 32, _K2)
    c3_w, c3_b = _conv_params(k3, 64, 64, _K3)
    params = {
        "c1_w": c1_w, "c1_b": c1_b,
        "c2_w": c2_w, "c2_b": c2_b,
        "c3_w": c3_w, "c3_b": c3_b,
        "fc1": _noisy_params(k4, conv_out, 512),
        "fc2": _noisy_params(k5, 512, n_actions),
    }
    # factorized-noise buffers (raw N(0,1) draws; torch resamples these per forward)
    eps = {
        "fc1": {"in": jax.random.normal(ke1, (1, conv_out), jnp.float32),
                "out": jax.random.normal(ke2, (512, 1), jnp.float32)},
        "fc2": {"in": jax.random.normal(ke3, (1, 512), jnp.float32),
                "out": jax.random.normal(ke4, (n_actions, 1), jnp.float32)},
    }
    return params, eps


# ----------------------------------------------------------------------------
# Pure-XLA reference (matches the PyTorch NoisyDQN forward)
# ----------------------------------------------------------------------------
def reference_forward(params, eps, x):
    def conv(v, w, b, s):
        y = jax.lax.conv_general_dilated(
            v, w, (s, s), "VALID", dimension_numbers=("NCHW", "OIHW", "NCHW"))
        return jax.nn.relu(y + b.reshape(1, -1, 1, 1))

    y = conv(x, params["c1_w"], params["c1_b"], _S1)
    y = conv(y, params["c2_w"], params["c2_b"], _S2)
    y = conv(y, params["c3_w"], params["c3_b"], _S3)
    flat = y.reshape(x.shape[0], -1)

    def noisy(h, p, e, relu):
        f = lambda v: jnp.sign(v) * jnp.sqrt(jnp.abs(v))
        ein, eout = f(e["in"]), f(e["out"])                  # (1,in), (out,1)
        w_eff = p["wT"].T + p["swT"].T * (ein * eout)        # (out, in)
        yv = h @ w_eff.T + p["b"] + p["sb"] * eout[:, 0]
        return jnp.maximum(yv, 0.0) if relu else yv

    h = noisy(flat, params["fc1"], eps["fc1"], True)
    return noisy(h, params["fc2"], eps["fc2"], False)


# ----------------------------------------------------------------------------
if __name__ == "__main__":
    key = jax.random.PRNGKey(0)
    kp, kx = jax.random.split(key)

    B, C, HW, n_actions = 2, 4, 36, 6        # 36 -> 8 -> 3 -> 1 spatial
    params, eps = init_all(kp, C, HW, n_actions)
    x = jax.random.normal(kx, (B, C, HW, HW), jnp.float32)   # NCHW, like torch

    packed = pack_inputs(params, eps, n_actions)             # one-time repack per draw
    q = noisy_dqn_forward(packed, x, n_actions=n_actions)
    q = jax.block_until_ready(q)

    assert q.shape == (B, n_actions) and q.dtype == jnp.float32
    assert bool(jnp.all(jnp.isfinite(q)))

    q_ref = reference_forward(params, eps, x)
    assert bool(jnp.allclose(q, q_ref, rtol=2e-2, atol=2e-2)), (q, q_ref)
    print("KERNEL_OK")
</pallas_src>

<mosaic_0001>
module attributes {stable_mosaic.version = 11 : i64} {
  func.func @_noisy_dqn_kernel(%arg0: i32, %arg1: memref<2x9x9x64xf32, #tpu.memory_space<vmem>>, %arg2: memref<2x2x64x32xbf16, #tpu.memory_space<vmem>>, %arg3: memref<1x32xf32, #tpu.memory_space<vmem>>, %arg4: memref<2x2x128x64xbf16, #tpu.memory_space<vmem>>, %arg5: memref<1x64xf32, #tpu.memory_space<vmem>>, %arg6: memref<3x192x64xbf16, #tpu.memory_space<vmem>>, %arg7: memref<1x64xf32, #tpu.memory_space<vmem>>, %arg8: memref<64x512xbf16, #tpu.memory_space<vmem>>, %arg9: memref<1x512xf32, #tpu.memory_space<vmem>>, %arg10: memref<512x128xbf16, #tpu.memory_space<vmem>>, %arg11: memref<1x128xf32, #tpu.memory_space<vmem>>, %arg12: memref<2x128xf32, #tpu.memory_space<vmem>>) attributes {dimension_semantics = [#tpu.dimension_semantics<parallel>], iteration_bounds = array<i64: 1>, scalar_prefetch = 0 : i64, scratch_operands = 0 : i64, tpu.core_type = #tpu.core_type<tc>, window_params = [{transform_indices = @transform_0, window_bounds = array<i64: 2, 9, 9, 64>}, {pipeline_mode = #tpu.pipeline_mode<synchronous>, transform_indices = @transform_1, window_bounds = array<i64: 2, 2, 64, 32>}, {pipeline_mode = #tpu.pipeline_mode<synchronous>, transform_indices = @transform_2, window_bounds = array<i64: 1, 32>}, {pipeline_mode = #tpu.pipeline_mode<synchronous>, transform_indices = @transform_3, window_bounds = array<i64: 2, 2, 128, 64>}, {pipeline_mode = #tpu.pipeline_mode<synchronous>, transform_indices = @transform_4, window_bounds = array<i64: 1, 64>}, {pipeline_mode = #tpu.pipeline_mode<synchronous>, transform_indices = @transform_5, window_bounds = array<i64: 3, 192, 64>}, {pipeline_mode = #tpu.pipeline_mode<synchronous>, transform_indices = @transform_6, window_bounds = array<i64: 1, 64>}, {pipeline_mode = #tpu.pipeline_mode<synchronous>, transform_indices = @transform_7, window_bounds = array<i64: 64, 512>}, {pipeline_mode = #tpu.pipeline_mode<synchronous>, transform_indices = @transform_8, window_bounds = array<i64: 1, 512>}, {pipeline_mode = #tpu.pipeline_mode<synchronous>, transform_indices = @transform_9, window_bounds = array<i64: 512, 128>}, {pipeline_mode = #tpu.pipeline_mode<synchronous>, transform_indices = @transform_10, window_bounds = array<i64: 1, 128>}, {transform_indices = @transform_11, window_bounds = array<i64: 2, 128>}]} {
    %c0 = arith.constant 0 : index
    %c0_0 = arith.constant 0 : index
    %c0_1 = arith.constant 0 : index
    %c0_2 = arith.constant 0 : index
    %0 = vector.load %arg1[%c0, %c0_0, %c0_1, %c0_2] : memref<2x9x9x64xf32, #tpu.memory_space<vmem>>, vector<2x8x8x64xf32>
    %1 = vector.shape_cast %0 : vector<2x8x8x64xf32> to vector<128x64xf32>
    %c0_3 = arith.constant 0 : index
    %c0_4 = arith.constant 0 : index
    %c0_5 = arith.constant 0 : index
    %c0_6 = arith.constant 0 : index
    %2 = vector.load %arg2[%c0_3, %c0_4, %c0_5, %c0_6] : memref<2x2x64x32xbf16, #tpu.memory_space<vmem>>, vector<1x1x64x32xbf16>
    %3 = vector.shape_cast %2 : vector<1x1x64x32xbf16> to vector<64x32xbf16>
    %4 = arith.truncf %1 : vector<128x64xf32> to vector<128x64xbf16>
    %cst = arith.constant dense<0.000000e+00> : vector<128x32xf32>
    %5 = tpu.matmul %4, %3, %cst {dimension_numbers = #tpu.dot_dimension_numbers<[1], [0], [0], [1], [0, 0, 1, 1], [], []>} : vector<128x64xbf16>, vector<64x32xbf16>, vector<128x32xf32> -> vector<128x32xf32>
    %c0_7 = arith.constant 0 : index
    %c0_8 = arith.constant 0 : index
    %c1 = arith.constant 1 : index
    %c0_9 = arith.constant 0 : index
    %6 = vector.load %arg1[%c0_7, %c0_8, %c1, %c0_9] : memref<2x9x9x64xf32, #tpu.memory_space<vmem>>, vector<2x8x8x64xf32>
    %7 = vector.shape_cast %6 : vector<2x8x8x64xf32> to vector<128x64xf32>
    %c0_10 = arith.constant 0 : index
    %c1_11 = arith.constant 1 : index
    %c0_12 = arith.constant 0 : index
    %c0_13 = arith.constant 0 : index
    %8 = vector.load %arg2[%c0_10, %c1_11, %c0_12, %c0_13] : memref<2x2x64x32xbf16, #tpu.memory_space<vmem>>, vector<1x1x64x32xbf16>
    %9 = vector.shape_cast %8 : vector<1x1x64x32xbf16> to vector<64x32xbf16>
    %10 = arith.truncf %7 : vector<128x64xf32> to vector<128x64xbf16>
    %cst_14 = arith.constant dense<0.000000e+00> : vector<128x32xf32>
    %11 = tpu.matmul %10, %9, %cst_14 {dimension_numbers = #tpu.dot_dimension_numbers<[1], [0], [0], [1], [0, 0, 1, 1], [], []>} : vector<128x64xbf16>, vector<64x32xbf16>, vector<128x32xf32> -> vector<128x32xf32>
    %12 = arith.addf %5, %11 : vector<128x32xf32>
    %c0_15 = arith.constant 0 : index
    %c1_16 = arith.constant 1 : index
    %c0_17 = arith.constant 0 : index
    %c0_18 = arith.constant 0 : index
    %13 = vector.load %arg1[%c0_15, %c1_16, %c0_17, %c0_18] : memref<2x9x9x64xf32, #tpu.memory_space<vmem>>, vector<2x8x8x64xf32>
    %14 = vector.shape_cast %13 : vector<2x8x8x64xf32> to vector<128x64xf32>
    %c1_19 = arith.constant 1 : index
    %c0_20 = arith.constant 0 : index
    %c0_21 = arith.constant 0 : index
    %c0_22 = arith.constant 0 : index
    %15 = vector.load %arg2[%c1_19, %c0_20, %c0_21, %c0_22] : memref<2x2x64x32xbf16, #tpu.memory_space<vmem>>, vector<1x1x64x32xbf16>
    %16 = vector.shape_cast %15 : vector<1x1x64x32xbf16> to vector<64x32xbf16>
    %17 = arith.truncf %14 : vector<128x64xf32> to vector<128x64xbf16>
    %cst_23 = arith.constant dense<0.000000e+00> : vector<128x32xf32>
    %18 = tpu.matmul %17, %16, %cst_23 {dimension_numbers = #tpu.dot_dimension_numbers<[1], [0], [0], [1], [0, 0, 1, 1], [], []>} : vector<128x64xbf16>, vector<64x32xbf16>, vector<128x32xf32> -> vector<128x32xf32>
    %19 = arith.addf %12, %18 : vector<128x32xf32>
    %c0_24 = arith.constant 0 : index
    %c1_25 = arith.constant 1 : index
    %c1_26 = arith.constant 1 : index
    %c0_27 = arith.constant 0 : index
    %20 = vector.load %arg1[%c0_24, %c1_25, %c1_26, %c0_27] : memref<2x9x9x64xf32, #tpu.memory_space<vmem>>, vector<2x8x8x64xf32>
    %21 = vector.shape_cast %20 : vector<2x8x8x64xf32> to vector<128x64xf32>
    %c1_28 = arith.constant 1 : index
    %c1_29 = arith.constant 1 : index
    %c0_30 = arith.constant 0 : index
    %c0_31 = arith.constant 0 : index
    %22 = vector.load %arg2[%c1_28, %c1_29, %c0_30, %c0_31] : memref<2x2x64x32xbf16, #tpu.memory_space<vmem>>, vector<1x1x64x32xbf16>
    %23 = vector.shape_cast %22 : vector<1x1x64x32xbf16> to vector<64x32xbf16>
    %24 = arith.truncf %21 : vector<128x64xf32> to vector<128x64xbf16>
    %cst_32 = arith.constant dense<0.000000e+00> : vector<128x32xf32>
    %25 = tpu.matmul %24, %23, %cst_32 {dimension_numbers = #tpu.dot_dimension_numbers<[1], [0], [0], [1], [0, 0, 1, 1], [], []>} : vector<128x64xbf16>, vector<64x32xbf16>, vector<128x32xf32> -> vector<128x32xf32>
    %26 = arith.addf %19, %25 : vector<128x32xf32>
    %c0_33 = arith.constant 0 : index
    %c0_34 = arith.constant 0 : index
    %27 = vector.load %arg3[%c0_33, %c0_34] : memref<1x32xf32, #tpu.memory_space<vmem>>, vector<1x32xf32>
    %28 = vector.broadcast %27 : vector<1x32xf32> to vector<128x32xf32>
    %29 = arith.addf %26, %28 : vector<128x32xf32>
    %cst_35 = arith.constant 0.000000e+00 : f32
    %30 = vector.broadcast %cst_35 : f32 to vector<128x32xf32>
    %31 = arith.maximumf %29, %30 : vector<128x32xf32>
    %32 = vector.shape_cast %31 : vector<128x32xf32> to vector<2x4x2x4x2x32xf32>
    %33 = vector.extract_strided_slice %32 {offsets = [0, 0, 0, 0, 0, 0], sizes = [2, 4, 1, 4, 1, 32], strides = [1, 1, 1, 1, 1, 1]} : vector<2x4x2x4x2x32xf32> to vector<2x4x1x4x1x32xf32>
    %34 = vector.shape_cast %33 : vector<2x4x1x4x1x32xf32> to vector<2x4x4x32xf32>
    %35 = vector.extract_strided_slice %32 {offsets = [0, 0, 0, 0, 1, 0], sizes = [2, 4, 1, 4, 1, 32], strides = [1, 1, 1, 1, 1, 1]} : vector<2x4x2x4x2x32xf32> to vector<2x4x1x4x1x32xf32>
    %36 = vector.shape_cast %35 : vector<2x4x1x4x1x32xf32> to vector<2x4x4x32xf32>
    %37 = vector.extract_strided_slice %32 {offsets = [0, 0, 1, 0, 0, 0], sizes = [2, 4, 1, 4, 1, 32], strides = [1, 1, 1, 1, 1, 1]} : vector<2x4x2x4x2x32xf32> to vector<2x4x1x4x1x32xf32>
    %38 = vector.shape_cast %37 : vector<2x4x1x4x1x32xf32> to vector<2x4x4x32xf32>
    %39 = vector.extract_strided_slice %32 {offsets = [0, 0, 1, 0, 1, 0], sizes = [2, 4, 1, 4, 1, 32], strides = [1, 1, 1, 1, 1, 1]} : vector<2x4x2x4x2x32xf32> to vector<2x4x1x4x1x32xf32>
    %40 = vector.shape_cast %39 : vector<2x4x1x4x1x32xf32> to vector<2x4x4x32xf32>
    %41 = tpu.concatenate %34, %36, %38, %40 in 3 : vector<2x4x4x32xf32>, vector<2x4x4x32xf32>, vector<2x4x4x32xf32>, vector<2x4x4x32xf32> -> vector<2x4x4x128xf32>
    %42 = vector.extract_strided_slice %41 {offsets = [0, 0, 0, 0], sizes = [2, 3, 3, 128], strides = [1, 1, 1, 1]} : vector<2x4x4x128xf32> to vector<2x3x3x128xf32>
    %43 = vector.shape_cast %42 : vector<2x3x3x128xf32> to vector<18x128xf32>
    %c0_36 = arith.constant 0 : index
    %c0_37 = arith.constant 0 : index
    %c0_38 = arith.constant 0 : index
    %c0_39 = arith.constant 0 : index
    %44 = vector.load %arg4[%c0_36, %c0_37, %c0_38, %c0_39] : memref<2x2x128x64xbf16, #tpu.memory_space<vmem>>, vector<1x1x128x64xbf16>
    %45 = vector.shape_cast %44 : vector<1x1x128x64xbf16> to vector<128x64xbf16>
    %46 = arith.truncf %43 : vector<18x128xf32> to vector<18x128xbf16>
    %cst_40 = arith.constant dense<0.000000e+00> : vector<18x64xf32>
    %47 = tpu.matmul %46, %45, %cst_40 {dimension_numbers = #tpu.dot_dimension_numbers<[1], [0], [0], [1], [0, 0, 1, 1], [], []>} : vector<18x128xbf16>, vector<128x64xbf16>, vector<18x64xf32> -> vector<18x64xf32>
    %48 = vector.extract_strided_slice %41 {offsets = [0, 0, 1, 0], sizes = [2, 3, 3, 128], strides = [1, 1, 1, 1]} : vector<2x4x4x128xf32> to vector<2x3x3x128xf32>
    %49 = vector.shape_cast %48 : vector<2x3x3x128xf32> to vector<18x128xf32>
    %c0_41 = arith.constant 0 : index
    %c1_42 = arith.constant 1 : index
    %c0_43 = arith.constant 0 : index
    %c0_44 = arith.constant 0 : index
    %50 = vector.load %arg4[%c0_41, %c1_42, %c0_43, %c0_44] : memref<2x2x128x64xbf16, #tpu.memory_space<vmem>>, vector<1x1x128x64xbf16>
    %51 = vector.shape_cast %50 : vector<1x1x128x64xbf16> to vector<128x64xbf16>
    %52 = arith.truncf %49 : vector<18x128xf32> to vector<18x128xbf16>
    %cst_45 = arith.constant dense<0.000000e+00> : vector<18x64xf32>
    %53 = tpu.matmul %52, %51, %cst_45 {dimension_numbers = #tpu.dot_dimension_numbers<[1], [0], [0], [1], [0, 0, 1, 1], [], []>} : vector<18x128xbf16>, vector<128x64xbf16>, vector<18x64xf32> -> vector<18x64xf32>
    %54 = arith.addf %47, %53 : vector<18x64xf32>
    %55 = vector.extract_strided_slice %41 {offsets = [0, 1, 0, 0], sizes = [2, 3, 3, 128], strides = [1, 1, 1, 1]} : vector<2x4x4x128xf32> to vector<2x3x3x128xf32>
    %56 = vector.shape_cast %55 : vector<2x3x3x128xf32> to vector<18x128xf32>
    %c1_46 = arith.constant 1 : index
    %c0_47 = arith.constant 0 : index
    %c0_48 = arith.constant 0 : index
    %c0_49 = arith.constant 0 : index
    %57 = vector.load %arg4[%c1_46, %c0_47, %c0_48, %c0_49] : memref<2x2x128x64xbf16, #tpu.memory_space<vmem>>, vector<1x1x128x64xbf16>
    %58 = vector.shape_cast %57 : vector<1x1x128x64xbf16> to vector<128x64xbf16>
    %59 = arith.truncf %56 : vector<18x128xf32> to vector<18x128xbf16>
    %cst_50 = arith.constant dense<0.000000e+00> : vector<18x64xf32>
    %60 = tpu.matmul %59, %58, %cst_50 {dimension_numbers = #tpu.dot_dimension_numbers<[1], [0], [0], [1], [0, 0, 1, 1], [], []>} : vector<18x128xbf16>, vector<128x64xbf16>, vector<18x64xf32> -> vector<18x64xf32>
    %61 = arith.addf %54, %60 : vector<18x64xf32>
    %62 = vector.extract_strided_slice %41 {offsets = [0, 1, 1, 0], sizes = [2, 3, 3, 128], strides = [1, 1, 1, 1]} : vector<2x4x4x128xf32> to vector<2x3x3x128xf32>
    %63 = vector.shape_cast %62 : vector<2x3x3x128xf32> to vector<18x128xf32>
    %c1_51 = arith.constant 1 : index
    %c1_52 = arith.constant 1 : index
    %c0_53 = arith.constant 0 : index
    %c0_54 = arith.constant 0 : index
    %64 = vector.load %arg4[%c1_51, %c1_52, %c0_53, %c0_54] : memref<2x2x128x64xbf16, #tpu.memory_space<vmem>>, vector<1x1x128x64xbf16>
    %65 = vector.shape_cast %64 : vector<1x1x128x64xbf16> to vector<128x64xbf16>
    %66 = arith.truncf %63 : vector<18x128xf32> to vector<18x128xbf16>
    %cst_55 = arith.constant dense<0.000000e+00> : vector<18x64xf32>
    %67 = tpu.matmul %66, %65, %cst_55 {dimension_numbers = #tpu.dot_dimension_numbers<[1], [0], [0], [1], [0, 0, 1, 1], [], []>} : vector<18x128xbf16>, vector<128x64xbf16>, vector<18x64xf32> -> vector<18x64xf32>
    %68 = arith.addf %61, %67 : vector<18x64xf32>
    %c0_56 = arith.constant 0 : index
    %c0_57 = arith.constant 0 : index
    %69 = vector.load %arg5[%c0_56, %c0_57] : memref<1x64xf32, #tpu.memory_space<vmem>>, vector<1x64xf32>
    %70 = vector.broadcast %69 : vector<1x64xf32> to vector<18x64xf32>
    %71 = arith.addf %68, %70 : vector<18x64xf32>
    %cst_58 = arith.constant 0.000000e+00 : f32
    %72 = vector.broadcast %cst_58 : f32 to vector<18x64xf32>
    %73 = arith.maximumf %71, %72 : vector<18x64xf32>
    %74 = vector.shape_cast %73 : vector<18x64xf32> to vector<2x3x3x64xf32>
    %75 = vector.extract_strided_slice %74 {offsets = [0, 0, 0, 0], sizes = [2, 1, 1, 64], strides = [1, 1, 1, 1]} : vector<2x3x3x64xf32> to vector<2x1x1x64xf32>
    %76 = vector.extract_strided_slice %74 {offsets = [0, 0, 1, 0], sizes = [2, 1, 1, 64], strides = [1, 1, 1, 1]} : vector<2x3x3x64xf32> to vector<2x1x1x64xf32>
    %77 = vector.extract_strided_slice %74 {offsets = [0, 0, 2, 0], sizes = [2, 1, 1, 64], strides = [1, 1, 1, 1]} : vector<2x3x3x64xf32> to vector<2x1x1x64xf32>
    %78 = tpu.concatenate %75, %76, %77 in 3 : vector<2x1x1x64xf32>, vector<2x1x1x64xf32>, vector<2x1x1x64xf32> -> vector<2x1x1x192xf32>
    %79 = vector.shape_cast %78 : vector<2x1x1x192xf32> to vector<2x192xf32>
    %c0_59 = arith.constant 0 : index
    %c0_60 = arith.constant 0 : index
    %c0_61 = arith.constant 0 : index
    %80 = vector.load %arg6[%c0_59, %c0_60, %c0_61] : memref<3x192x64xbf16, #tpu.memory_space<vmem>>, vector<1x192x64xbf16>
    %81 = vector.shape_cast %80 : vector<1x192x64xbf16> to vector<192x64xbf16>
    %82 = arith.truncf %79 : vector<2x192xf32> to vector<2x192xbf16>
    %cst_62 = arith.constant dense<0.000000e+00> : vector<2x64xf32>
    %83 = tpu.matmul %82, %81, %cst_62 {dimension_numbers = #tpu.dot_dimension_numbers<[1], [0], [0], [1], [0, 0, 1, 1], [], []>} : vector<2x192xbf16>, vector<192x64xbf16>, vector<2x64xf32> -> vector<2x64xf32>
    %84 = vector.extract_strided_slice %74 {offsets = [0, 1, 0, 0], sizes = [2, 1, 1, 64], strides = [1, 1, 1, 1]} : vector<2x3x3x64xf32> to vector<2x1x1x64xf32>
    %85 = vector.extract_strided_slice %74 {offsets = [0, 1, 1, 0], sizes = [2, 1, 1, 64], strides = [1, 1, 1, 1]} : vector<2x3x3x64xf32> to vector<2x1x1x64xf32>
    %86 = vector.extract_strided_slice %74 {offsets = [0, 1, 2, 0], sizes = [2, 1, 1, 64], strides = [1, 1, 1, 1]} : vector<2x3x3x64xf32> to vector<2x1x1x64xf32>
    %87 = tpu.concatenate %84, %85, %86 in 3 : vector<2x1x1x64xf32>, vector<2x1x1x64xf32>, vector<2x1x1x64xf32> -> vector<2x1x1x192xf32>
    %88 = vector.shape_cast %87 : vector<2x1x1x192xf32> to vector<2x192xf32>
    %c1_63 = arith.constant 1 : index
    %c0_64 = arith.constant 0 : index
    %c0_65 = arith.constant 0 : index
    %89 = vector.load %arg6[%c1_63, %c0_64, %c0_65] : memref<3x192x64xbf16, #tpu.memory_space<vmem>>, vector<1x192x64xbf16>
    %90 = vector.shape_cast %89 : vector<1x192x64xbf16> to vector<192x64xbf16>
    %91 = arith.truncf %88 : vector<2x192xf32> to vector<2x192xbf16>
    %cst_66 = arith.constant dense<0.000000e+00> : vector<2x64xf32>
    %92 = tpu.matmul %91, %90, %cst_66 {dimension_numbers = #tpu.dot_dimension_numbers<[1], [0], [0], [1], [0, 0, 1, 1], [], []>} : vector<2x192xbf16>, vector<192x64xbf16>, vector<2x64xf32> -> vector<2x64xf32>
    %93 = arith.addf %83, %92 : vector<2x64xf32>
    %94 = vector.extract_strided_slice %74 {offsets = [0, 2, 0, 0], sizes = [2, 1, 1, 64], strides = [1, 1, 1, 1]} : vector<2x3x3x64xf32> to vector<2x1x1x64xf32>
    %95 = vector.extract_strided_slice %74 {offsets = [0, 2, 1, 0], sizes = [2, 1, 1, 64], strides = [1, 1, 1, 1]} : vector<2x3x3x64xf32> to vector<2x1x1x64xf32>
    %96 = vector.extract_strided_slice %74 {offsets = [0, 2, 2, 0], sizes = [2, 1, 1, 64], strides = [1, 1, 1, 1]} : vector<2x3x3x64xf32> to vector<2x1x1x64xf32>
    %97 = tpu.concatenate %94, %95, %96 in 3 : vector<2x1x1x64xf32>, vector<2x1x1x64xf32>, vector<2x1x1x64xf32> -> vector<2x1x1x192xf32>
    %98 = vector.shape_cast %97 : vector<2x1x1x192xf32> to vector<2x192xf32>
    %c2 = arith.constant 2 : index
    %c0_67 = arith.constant 0 : index
    %c0_68 = arith.constant 0 : index
    %99 = vector.load %arg6[%c2, %c0_67, %c0_68] : memref<3x192x64xbf16, #tpu.memory_space<vmem>>, vector<1x192x64xbf16>
    %100 = vector.shape_cast %99 : vector<1x192x64xbf16> to vector<192x64xbf16>
    %101 = arith.truncf %98 : vector<2x192xf32> to vector<2x192xbf16>
    %cst_69 = arith.constant dense<0.000000e+00> : vector<2x64xf32>
    %102 = tpu.matmul %101, %100, %cst_69 {dimension_numbers = #tpu.dot_dimension_numbers<[1], [0], [0], [1], [0, 0, 1, 1], [], []>} : vector<2x192xbf16>, vector<192x64xbf16>, vector<2x64xf32> -> vector<2x64xf32>
    %103 = arith.addf %93, %102 : vector<2x64xf32>
    %c0_70 = arith.constant 0 : index
    %c0_71 = arith.constant 0 : index
    %104 = vector.load %arg7[%c0_70, %c0_71] : memref<1x64xf32, #tpu.memory_space<vmem>>, vector<1x64xf32>
    %105 = vector.broadcast %104 : vector<1x64xf32> to vector<2x64xf32>
    %106 = arith.addf %103, %105 : vector<2x64xf32>
    %cst_72 = arith.constant 0.000000e+00 : f32
    %107 = vector.broadcast %cst_72 : f32 to vector<2x64xf32>
    %108 = arith.maximumf %106, %107 : vector<2x64xf32>
    %c0_73 = arith.constant 0 : index
    %c0_74 = arith.constant 0 : index
    %109 = vector.load %arg8[%c0_73, %c0_74] : memref<64x512xbf16, #tpu.memory_space<vmem>>, vector<64x512xbf16>
    %110 = arith.truncf %108 : vector<2x64xf32> to vector<2x64xbf16>
    %cst_75 = arith.constant dense<0.000000e+00> : vector<2x512xf32>
    %111 = tpu.matmul %110, %109, %cst_75 {dimension_numbers = #tpu.dot_dimension_numbers<[1], [0], [0], [1], [0, 0, 1, 1], [], []>} : vector<2x64xbf16>, vector<64x512xbf16>, vector<2x512xf32> -> vector<2x512xf32>
    %c0_76 = arith.constant 0 : index
    %c0_77 = arith.constant 0 : index
    %112 = vector.load %arg9[%c0_76, %c0_77] : memref<1x512xf32, #tpu.memory_space<vmem>>, vector<1x512xf32>
    %113 = vector.broadcast %112 : vector<1x512xf32> to vector<2x512xf32>
    %114 = arith.addf %111, %113 : vector<2x512xf32>
    %cst_78 = arith.constant 0.000000e+00 : f32
    %115 = vector.broadcast %cst_78 : f32 to vector<2x512xf32>
    %116 = arith.maximumf %114, %115 : vector<2x512xf32>
    %c0_79 = arith.constant 0 : index
    %c0_80 = arith.constant 0 : index
    %117 = vector.load %arg10[%c0_79, %c0_80] : memref<512x128xbf16, #tpu.memory_space<vmem>>, vector<512x128xbf16>
    %118 = arith.truncf %116 : vector<2x512xf32> to vector<2x512xbf16>
    %cst_81 = arith.constant dense<0.000000e+00> : vector<2x128xf32>
    %119 = tpu.matmul %118, %117, %cst_81 {dimension_numbers = #tpu.dot_dimension_numbers<[1], [0], [0], [1], [0, 0, 1, 1], [], []>} : vector<2x512xbf16>, vector<512x128xbf16>, vector<2x128xf32> -> vector<2x128xf32>
    %c0_82 = arith.constant 0 : index
    %c0_83 = arith.constant 0 : index
    %120 = vector.load %arg11[%c0_82, %c0_83] : memref<1x128xf32, #tpu.memory_space<vmem>>, vector<1x128xf32>
    %121 = vector.broadcast %120 : vector<1x128xf32> to vector<2x128xf32>
    %122 = arith.addf %119, %121 : vector<2x128xf32>
    %c0_84 = arith.constant 0 : index
    %c0_85 = arith.constant 0 : index
    %123 = vector.load %arg12[%c0_84, %c0_85] : memref<2x128xf32, #tpu.memory_space<vmem>>, vector<2x128xf32>
    tpu.vector_store %arg12[%c0_84, %c0_85], %122 {strides = array<i32>} : memref<2x128xf32, #tpu.memory_space<vmem>>, vector<2x128xf32>,
    return
  }
  func.func @transform_0(%arg0: i32) -> (i32, i32, i32, i32) {
    %c0_i32 = arith.constant 0 : i32
    %c0_i32_0 = arith.constant 0 : i32
    %c0_i32_1 = arith.constant 0 : i32
    %c0_i32_2 = arith.constant 0 : i32
    return %arg0, %c0_i32, %c0_i32_0, %c0_i32_1 : i32, i32, i32, i32
  }
  func.func @transform_1(%arg0: i32) -> (i32, i32, i32, i32) {
    %c0_i32 = arith.constant 0 : i32
    %c0_i32_0 = arith.constant 0 : i32
    %c0_i32_1 = arith.constant 0 : i32
    %c0_i32_2 = arith.constant 0 : i32
    %c0_i32_3 = arith.constant 0 : i32
    return %c0_i32, %c0_i32_0, %c0_i32_1, %c0_i32_2 : i32, i32, i32, i32
  }
  func.func @transform_2(%arg0: i32) -> (i32, i32) {
    %c0_i32 = arith.constant 0 : i32
    %c0_i32_0 = arith.constant 0 : i32
    %c0_i32_1 = arith.constant 0 : i32
    return %c0_i32, %c0_i32_0 : i32, i32
  }
  func.func @transform_3(%arg0: i32) -> (i32, i32, i32, i32) {
    %c0_i32 = arith.constant 0 : i32
    %c0_i32_0 = arith.constant 0 : i32
    %c0_i32_1 = arith.constant 0 : i32
    %c0_i32_2 = arith.constant 0 : i32
    %c0_i32_3 = arith.constant 0 : i32
    return %c0_i32, %c0_i32_0, %c0_i32_1, %c0_i32_2 : i32, i32, i32, i32
  }
  func.func @transform_4(%arg0: i32) -> (i32, i32) {
    %c0_i32 = arith.constant 0 : i32
    %c0_i32_0 = arith.constant 0 : i32
    %c0_i32_1 = arith.constant 0 : i32
    return %c0_i32, %c0_i32_0 : i32, i32
  }
  func.func @transform_5(%arg0: i32) -> (i32, i32, i32) {
    %c0_i32 = arith.constant 0 : i32
    %c0_i32_0 = arith.constant 0 : i32
    %c0_i32_1 = arith.constant 0 : i32
    %c0_i32_2 = arith.constant 0 : i32
    return %c0_i32, %c0_i32_0, %c0_i32_1 : i32, i32, i32
  }
  func.func @transform_6(%arg0: i32) -> (i32, i32) {
    %c0_i32 = arith.constant 0 : i32
    %c0_i32_0 = arith.constant 0 : i32
    %c0_i32_1 = arith.constant 0 : i32
    return %c0_i32, %c0_i32_0 : i32, i32
  }
  func.func @transform_7(%arg0: i32) -> (i32, i32) {
    %c0_i32 = arith.constant 0 : i32
    %c0_i32_0 = arith.constant 0 : i32
    %c0_i32_1 = arith.constant 0 : i32
    return %c0_i32, %c0_i32_0 : i32, i32
  }
  func.func @transform_8(%arg0: i32) -> (i32, i32) {
    %c0_i32 = arith.constant 0 : i32
    %c0_i32_0 = arith.constant 0 : i32
    %c0_i32_1 = arith.constant 0 : i32
    return %c0_i32, %c0_i32_0 : i32, i32
  }
  func.func @transform_9(%arg0: i32) -> (i32, i32) {
    %c0_i32 = arith.constant 0 : i32
    %c0_i32_0 = arith.constant 0 : i32
    %c0_i32_1 = arith.constant 0 : i32
    return %c0_i32, %c0_i32_0 : i32, i32
  }
  func.func @transform_10(%arg0: i32) -> (i32, i32) {
    %c0_i32 = arith.constant 0 : i32
    %c0_i32_0 = arith.constant 0 : i32
    %c0_i32_1 = arith.constant 0 : i32
    return %c0_i32, %c0_i32_0 : i32, i32
  }
  func.func @transform_11(%arg0: i32) -> (i32, i32) {
    %c0_i32 = arith.constant 0 : i32
    %c0_i32_0 = arith.constant 0 : i32
    return %arg0, %c0_i32 : i32, i32
  }
}

</mosaic_0001>

<bundles_post_ra>
// kernel: noisy_dqn_forward.1
= control target key start
LH: loop header
LB: loop body
LE: loop exit
PB: predicated region body
PF: predicated region fallthrough
CT: control target
= control target key end

     0   :  { %s4512_s0 = inlined_call_operand.vmem [shape: f32[2,9,9,64], index: 0, kind: input, shape index: {}]   ;;  %s4513_s1 = inlined_call_operand.vmem [shape: bf16[2,2,64,32], index: 1, kind: input, shape index: {}]   ;;  %s4514_s2 = inlined_call_operand.vmem [shape: f32[1,32], index: 2, kind: input, shape index: {}]   ;;  %s4515_s3 = inlined_call_operand.vmem [shape: bf16[2,2,128,64], index: 3, kind: input, shape index: {}]   ;;  %s4516_s4 = inlined_call_operand.vmem [shape: f32[1,64], index: 4, kind: input, shape index: {}]   ;;  %s4517_s5 = inlined_call_operand.vmem [shape: bf16[3,192,64], index: 5, kind: input, shape index: {}]   ;;  %s4518_s6 = inlined_call_operand.vmem [shape: f32[1,64], index: 6, kind: input, shape index: {}]   ;;  %s4519_s7 = inlined_call_operand.vmem [shape: bf16[64,512], index: 7, kind: input, shape index: {}]   ;;  %s4520_s8 = inlined_call_operand.vmem [shape: f32[1,512], index: 8, kind: input, shape index: {}]   ;;  %s4521_s9 = inlined_call_operand.vmem [shape: bf16[512,128], index: 9, kind: input, shape index: {}]   ;;  %s4522_s10 = inlined_call_operand.vmem [shape: f32[1,128], index: 10, kind: input, shape index: {}]   ;;  %s4523_s11 = inlined_call_operand.hbm [shape: f32[2,128], index: 11, kind: output, shape index: {}]  }
   0x1   :  { %v3307_v0 = vld [vmem:[%s4513_s1 + $0x38] sm:$0xff]  ;;  %v3306_v4 = vld [vmem:[%s4513_s1 + $0x30] sm:$0xff]  ;;  %v3305_v8 = vld [vmem:[%s4513_s1 + $0x28] sm:$0xff] }
   0x2   :  { %v3303_v1 = vld [vmem:[%s4513_s1 + $0x18] sm:$0xff]  ;;  %158 = vmatpush.bf16.msra.mxu0 %v3307_v0  ;;  %v3302_v5 = vld [vmem:[%s4513_s1 + $0x10] sm:$0xff]  ;;  %v3301_v9 = vld [vmem:[%s4513_s1 + $0x8] sm:$0xff] }
   0x3   :  { %v3311_v2 = vld [vmem:[%s4513_s1 + $0x58] sm:$0xff]  ;;  %255 = vmatpush.bf16.msra.mxu1 %v3303_v1  ;;  %v3310_v6 = vld [vmem:[%s4513_s1 + $0x50] sm:$0xff]  ;;  %v3309_v10 = vld [vmem:[%s4513_s1 + $0x48] sm:$0xff] }
   0x4   :  { %v3315_v3 = vld [vmem:[%s4513_s1 + $0x78] sm:$0xff]  ;;  %386 = vmatpush.bf16.msra.mxu2 %v3311_v2  ;;  %v3314_v7 = vld [vmem:[%s4513_s1 + $0x70] sm:$0xff]  ;;  %v3313_v11 = vld [vmem:[%s4513_s1 + $0x68] sm:$0xff] }
   0x5   :  { %532 = vmatpush.bf16.msra.mxu3 %v3315_v3  ;;  %v3304_v12 = vld [vmem:[%s4513_s1 + $0x20] sm:$0xff]  ;;  %v73_v15 = vld [vmem:[%s4512_s0 + $0x11] sm:$0xff] }
   0x6   :  { %159 = vmatpush.bf16.msra.mxu0 %v3306_v4  ;;  %v3300_v13 = vld [vmem:[%s4513_s1] sm:$0xff]  ;;  %v41_v18 = vld [vmem:[%s4512_s0 + $0x10] sm:$0xff] }
   0x7   :  { %256 = vmatpush.bf16.msra.mxu1 %v3302_v5  ;;  %v72_v14 = vld [vmem:[%s4512_s0 + $0x1] sm:$0xff] }
   0x8   :  { %387 = vmatpush.bf16.msra.mxu2 %v3310_v6  ;;  %v40_v16 = vld [vmem:[%s4512_s0] sm:$0xff] }
   0x9   :  { %533 = vmatpush.bf16.msra.mxu3 %v3314_v7  ;;  %v3308_v17 = vld [vmem:[%s4513_s1 + $0x40] sm:$0xff] }
   0xa   :  { %160 = vmatpush.bf16.msra.mxu0 %v3305_v8 }
   0xb   :  { %257 = vmatpush.bf16.msra.mxu1 %v3301_v9 }
   0xc   :  { %16 = vsyncpa [#allocation3], 0  ;;  %388 = vmatpush.bf16.msra.mxu2 %v3309_v10  ;;  %v3312_v19 = vld [vmem:[%s4513_s1 + $0x60] sm:$0xff]  ;;  %v97_v22 = vpack.c.bf16 %v73_v15, %v72_v14  ;;  %v64_v23 = vpack.c.bf16 %v41_v18, %v40_v16  ;;  %vm129_vm0 = vcmask 523264   ;;  %v75_v26 = vld [vmem:[%s4512_s0 + $0x31] sm:$0xff]  ;;  %vm725_vm1 = vcmask 1041409  }
   0xd   :  { %534 = vmatpush.bf16.msra.mxu3 %v3313_v11  ;;  %v2638_v20 = vld [vmem:[%s4512_s0 + $0x20] sm:$0xff]  ;;  %v43_v27 = vld [vmem:[%s4512_s0 + $0x30] sm:$0xff]  ;;  %vm727_vm2 = vcmask 1042434   ;;  %vm729_vm3 = vcmask 1043459   ;;  %s3482_s23 = smov 64   ;;  %s3483_s24 = smov 96  }
   0xe   :  { %v2686_v21 = vld [vmem:[%s4512_s0 + $0x21] sm:$0xff]  ;;  %161 = vmatpush.bf16.msra.mxu0 %v3304_v12  ;;  %v326_v24 = vpack.c.bf16 %v2638_v20, %v41_v18  ;;  %v65_v31 = vpack.c.bf16 %v43_v27, %v2638_v20  ;;  %v77_v34 = vld [vmem:[%s4512_s0 + $0x51] sm:$0xff]  ;;  %vm1000_vm4 = vcmask 261120   ;;  %vm1017_vm5 = vcmask 785408   ;;  %s2572_s14 = sshll.u32 %s4523_s11, 4  ;;  %s2573_s14 = int_to_ptr.hbm [resolvable:$true] %s2572_s14 }
   0xf   :  { %258 = vmatpush.bf16.msra.mxu1 %v3300_v13  ;;  %v472_v25 = vpack.c.bf16 %v2686_v21, %v73_v15  ;;  %v2640_v28 = vld [vmem:[%s4512_s0 + $0x40] sm:$0xff]  ;;  %v98_v30 = vpack.c.bf16 %v75_v26, %v2686_v21  ;;  %v45_v35 = vld [vmem:[%s4512_s0 + $0x50] sm:$0xff] }
  0x10   :  { %389 = vmatpush.bf16.msra.mxu2 %v3308_v17  ;;  %v2688_v29 = vld [vmem:[%s4512_s0 + $0x41] sm:$0xff]  ;;  %v327_v32 = vpack.c.bf16 %v2640_v28, %v43_v27  ;;  %v66_v39 = vpack.c.bf16 %v45_v35, %v2640_v28  ;;  %v79_v42 = vld [vmem:[%s4512_s0 + $0x71] sm:$0xff] }
  0x11   :  { %535 = vmatpush.bf16.msra.mxu3 %v3312_v19  ;;  %2605 = vmatmul.msk.bf16.vlgmr.msra.gmra.mxu0 %vm129_vm0, %v97_v22  ;;  %v473_v33 = vpack.c.bf16 %v2688_v29, %v75_v26  ;;  %v2642_v36 = vld [vmem:[%s4512_s0 + $0x60] sm:$0xff]  ;;  %v99_v38 = vpack.c.bf16 %v77_v34, %v2688_v29  ;;  %v47_v43 = vld [vmem:[%s4512_s0 + $0x70] sm:$0xff] }
  0x12   :  { %2629 = vmatmul.msk.bf16.vlgmr.msra.gmra.mxu1 %vm129_vm0, %v64_v23  ;;  %v2690_v37 = vld [vmem:[%s4512_s0 + $0x61] sm:$0xff]  ;;  %v328_v40 = vpack.c.bf16 %v2642_v36, %v45_v35  ;;  %v67_v47 = vpack.c.bf16 %v47_v43, %v2642_v36  ;;  %v80_v50 = vld [vmem:[%s4512_s0 + $0x91] sm:$0xff]  ;;  %v3736_v26 = vld [vmem:[%s4514_s2] ss:$0 sm:$0xff]  ;;  %s3481_s2 = smov 32  }
  0x13   :  { %2677 = vmatmul.msk.bf16.vlgmr.msra.gmra.mxu2 %vm129_vm0, %v326_v24  ;;  %v474_v41 = vpack.c.bf16 %v2690_v37, %v77_v34  ;;  %v2644_v44 = vld [vmem:[%s4512_s0 + $0x80] sm:$0xff]  ;;  %v100_v46 = vpack.c.bf16 %v79_v42, %v2690_v37  ;;  %v48_v52 = vld [vmem:[%s4512_s0 + $0x90] sm:$0xff] }
  0x14   :  { %2725 = vmatmul.msk.bf16.vlgmr.msra.gmra.mxu3 %vm129_vm0, %v472_v25  ;;  %v2692_v45 = vld [vmem:[%s4512_s0 + $0x81] sm:$0xff]  ;;  %v329_v48 = vpack.c.bf16 %v2644_v44, %v47_v43  ;;  %v2646_v54 = vld [vmem:[%s4512_s0 + $0xb0] sm:$0xff] }
  0x15   :  { %v475_v49 = vpack.c.bf16 %v2692_v45, %v79_v42  ;;  %v81_v51 = vld [vmem:[%s4512_s0 + $0xa1] sm:$0xff]  ;;  %v2694_v55 = vld [vmem:[%s4512_s0 + $0xb1] sm:$0xff] }
  0x16   :  { %v49_v53 = vld [vmem:[%s4512_s0 + $0xa0] sm:$0xff]  ;;  %v101_v56 = vpack.c.bf16 %v81_v51, %v80_v50  ;;  %v476_v59 = vpack.c.bf16 %v2694_v55, %v81_v51  ;;  %v2648_v62 = vld [vmem:[%s4512_s0 + $0xd0] sm:$0xff] }
  0x17   :  { %v68_v57 = vpack.c.bf16 %v49_v53, %v48_v52  ;;  %v330_v58 = vpack.c.bf16 %v2646_v54, %v49_v53  ;;  %v83_v60 = vld [vmem:[%s4512_s0 + $0xc1] sm:$0xff]  ;;  %v2696_v63 = vld [vmem:[%s4512_s0 + $0xd1] sm:$0xff] }
  0x18   :  { %v51_v61 = vld [vmem:[%s4512_s0 + $0xc0] sm:$0xff]  ;;  %v102_v0 = vpack.c.bf16 %v83_v60, %v2694_v55  ;;  %v477_v3 = vpack.c.bf16 %v2696_v63, %v83_v60  ;;  %v2650_v6 = vld [vmem:[%s4512_s0 + $0xf0] sm:$0xff] }
  0x19   :  { %v69_v1 = vpack.c.bf16 %v51_v61, %v2646_v54  ;;  %v331_v2 = vpack.c.bf16 %v2648_v62, %v51_v61  ;;  %v85_v4 = vld [vmem:[%s4512_s0 + $0xe1] sm:$0xff]  ;;  %v2698_v7 = vld [vmem:[%s4512_s0 + $0xf1] sm:$0xff] }
  0x1a   :  { %v53_v5 = vld [vmem:[%s4512_s0 + $0xe0] sm:$0xff]  ;;  %v103_v8 = vpack.c.bf16 %v85_v4, %v2696_v63  ;;  %v478_v11 = vpack.c.bf16 %v2698_v7, %v85_v4  ;;  %v2652_v13 = vld [vmem:[%s4512_s0 + $0x110] sm:$0xff] }
  0x1b   :  { %v70_v9 = vpack.c.bf16 %v53_v5, %v2648_v62  ;;  %v332_v10 = vpack.c.bf16 %v2650_v6, %v53_v5  ;;  %v2651_v12 = vld [vmem:[%s4512_s0 + $0x100] sm:$0xff]  ;;  %v2700_v15 = vld [vmem:[%s4512_s0 + $0x111] sm:$0xff] }
  0x1c   :  { %v2699_v14 = vld [vmem:[%s4512_s0 + $0x101] sm:$0xff]  ;;  %v71_v17 = vpack.c.bf16 %v2651_v12, %v2650_v6  ;;  %v333_v18 = vpack.c.bf16 %v2652_v13, %v2651_v12 }
  0x1d   :  { %v104_v16 = vpack.c.bf16 %v2699_v14, %v2698_v7  ;;  %v479_v19 = vpack.c.bf16 %v2700_v15, %v2699_v14 }
  0x21   :  { %2606 = vmatmul.msk.bf16.gmra.mxu0 %vm129_vm0, %v98_v30 }
  0x22   :  { %2630 = vmatmul.msk.bf16.gmra.mxu1 %vm129_vm0, %v65_v31 }
  0x23   :  { %2678 = vmatmul.msk.bf16.gmra.mxu2 %vm129_vm0, %v327_v32 }
  0x24   :  { %2726 = vmatmul.msk.bf16.gmra.mxu3 %vm129_vm0, %v473_v33 }
  0x31   :  { %2607 = vmatmul.msk.bf16.gmra.mxu0 %vm129_vm0, %v99_v38 }
  0x32   :  { %2631 = vmatmul.msk.bf16.gmra.mxu1 %vm129_vm0, %v66_v39 }
  0x33   :  { %2679 = vmatmul.msk.bf16.gmra.mxu2 %vm129_vm0, %v328_v40 }
  0x34   :  { %2727 = vmatmul.msk.bf16.gmra.mxu3 %vm129_vm0, %v474_v41 }
  0x41   :  { %2608 = vmatmul.msk.bf16.gmra.mxu0 %vm129_vm0, %v100_v46 }
  0x42   :  { %2632 = vmatmul.msk.bf16.gmra.mxu1 %vm129_vm0, %v67_v47 }
  0x43   :  { %2680 = vmatmul.msk.bf16.gmra.mxu2 %vm129_vm0, %v329_v48 }
  0x44   :  { %2728 = vmatmul.msk.bf16.gmra.mxu3 %vm129_vm0, %v475_v49 }
  0x51   :  { %2609 = vmatmul.msk.bf16.gmra.mxu0 %vm129_vm0, %v101_v56 }
  0x52   :  { %2633 = vmatmul.msk.bf16.gmra.mxu1 %vm129_vm0, %v68_v57 }
  0x53   :  { %2681 = vmatmul.msk.bf16.gmra.mxu2 %vm129_vm0, %v330_v58 }
  0x54   :  { %2729 = vmatmul.msk.bf16.gmra.mxu3 %vm129_vm0, %v476_v59 }
  0x61   :  { %2610 = vmatmul.msk.bf16.gmra.mxu0 %vm129_vm0, %v102_v0 }
  0x62   :  { %2634 = vmatmul.msk.bf16.gmra.mxu1 %vm129_vm0, %v69_v1 }
  0x63   :  { %2682 = vmatmul.msk.bf16.gmra.mxu2 %vm129_vm0, %v331_v2 }
  0x64   :  { %2730 = vmatmul.msk.bf16.gmra.mxu3 %vm129_vm0, %v477_v3 }
  0x71   :  { %2611 = vmatmul.msk.bf16.gmra.mxu0 %vm129_vm0, %v103_v8 }
  0x72   :  { %2635 = vmatmul.msk.bf16.gmra.mxu1 %vm129_vm0, %v70_v9 }
  0x73   :  { %2683 = vmatmul.msk.bf16.gmra.mxu2 %vm129_vm0, %v332_v10 }
  0x74   :  { %2731 = vmatmul.msk.bf16.gmra.mxu3 %vm129_vm0, %v478_v11 }
  0x81   :  { %2612 = vmatmul.msk.bf16.gmra.mxu0 %vm129_vm0, %v104_v16 }
  0x82   :  { %2636 = vmatmul.msk.bf16.gmra.mxu1 %vm129_vm0, %v71_v17 }
  0x83   :  { %2684 = vmatmul.msk.bf16.gmra.mxu2 %vm129_vm0, %v333_v18 }
  0x84   :  { %2732 = vmatmul.msk.bf16.gmra.mxu3 %vm129_vm0, %v479_v19 }
  0x8e   :  { %v163_v20 = vpop.f32.mrf.mxu0 }
  0x8f   :  { %v260_v21 = vpop.f32.mrf.mxu1 }
  0x90   :  { %v261_v22 = vadd.f32 %v260_v21, %v163_v20 }
  0x96   :  { %v391_v23 = vpop.f32.mrf.mxu2  ;;  %v165_v27 = vpop.f32.mrf.mxu0 }
  0x97   :  { %v537_v24 = vpop.f32.mrf.mxu3  ;;  %v431_v25 = vadd.f32 %v391_v23, %v261_v22  ;;  %v262_v28 = vpop.f32.mrf.mxu1 }
  0x98   :  { %v263_v32 = vadd.f32 %v262_v28, %v165_v27 }
  0x99   :  { %v577_v29 = vadd.f32 %v537_v24, %v431_v25 }
  0x9b   :  { %v597_v30 = vadd.f32 %v3736_v26, %v577_v29 }
  0x9d   :  { %v613_v31 = vmax.f32 %v597_v30, 0.0 }
  0x9e   :  { %v393_v33 = vpop.f32.mrf.mxu2  ;;  %v168_v36 = vpop.f32.mrf.mxu0 }
  0x9f   :  { %v539_v34 = vpop.f32.mrf.mxu3  ;;  %v432_v35 = vadd.f32 %v393_v33, %v263_v32  ;;  %v265_v37 = vpop.f32.mrf.mxu1  ;;  %v645_v38 = vrot.slane %v613_v31, 2  ;;  %v646_v39 = vrot.slane %v613_v31, 4  ;;  %v647_v40 = vrot.slane %v613_v31, 6 }
  0xa0   :  { %v760_v42 = vperm.slane %v613_v31, 1  ;;  %v693_v45 = vperm.slane %v613_v31, 0  ;;  %v266_v49 = vadd.f32 %v265_v37, %v168_v36 }
  0xa1   :  { %v578_v41 = vadd.f32 %v539_v34, %v432_v35  ;;  %v761_v43 = vperm.slane %v645_v38, 1  ;;  %v762_v44 = vperm.slane %v646_v39, 1  ;;  %v695_v46 = vperm.slane %v646_v39, 0 }
  0xa2   :  { %v694_v47 = vperm.slane %v645_v38, 0  ;;  %v763_v50 = vperm.slane %v647_v40, 1  ;;  %v696_v53 = vperm.slane %v647_v40, 0 }
  0xa3   :  { %v598_v48 = vadd.f32 %v3736_v26, %v578_v41  ;;  %v792_v51 = vsel %vm725_vm1, %v761_v43, %v760_v42 }
  0xa4   :  { %v793_v52 = vsel %vm727_vm2, %v762_v44, %v792_v51  ;;  %v726_v54 = vsel %vm725_vm1, %v694_v47, %v693_v45 }
  0xa5   :  { %v614_v55 = vmax.f32 %v598_v48, 0.0  ;;  %v794_v56 = vsel %vm729_vm3, %v763_v50, %v793_v52  ;;  %v728_v57 = vsel %vm727_vm2, %v695_v46, %v726_v54 }
  0xa6   :  { %v396_v58 = vpop.f32.mrf.mxu2  ;;  %816 = vrot.lane.b32.xlu0 %v794_v56, %s3481_s2  ;;  %v3747_v60 = vsel %vm729_vm3, %v696_v53, %v728_v57  ;;  %v170_v62 = vpop.f32.mrf.mxu0 }
  0xa7   :  { %v542_v59 = vpop.f32.mrf.mxu3  ;;  %v433_v61 = vadd.f32 %v396_v58, %v266_v49  ;;  %v267_v63 = vpop.f32.mrf.mxu1  ;;  %v648_v0 = vrot.slane %v614_v55, 2  ;;  %v649_v1 = vrot.slane %v614_v55, 4  ;;  %v650_v2 = vrot.slane %v614_v55, 6 }
  0xa8   :  { %v840_v4 = vperm.slane %v614_v55, 0  ;;  %v920_v7 = vperm.slane %v614_v55, 1  ;;  %v268_v17 = vadd.f32 %v267_v63, %v170_v62 }
  0xa9   :  { %v579_v3 = vadd.f32 %v542_v59, %v433_v61  ;;  %v841_v5 = vperm.slane %v648_v0, 0  ;;  %v842_v6 = vperm.slane %v649_v1, 0  ;;  %v921_v8 = vperm.slane %v648_v0, 1 }
  0xaa   :  { %v922_v9 = vperm.slane %v649_v1, 1  ;;  %v843_v11 = vperm.slane %v650_v2, 0  ;;  %v923_v14 = vperm.slane %v650_v2, 1 }
  0xab   :  { %v599_v10 = vadd.f32 %v3736_v26, %v579_v3  ;;  %v872_v12 = vsel %vm725_vm1, %v841_v5, %v840_v4  ;;  %v952_v15 = vsel %vm725_vm1, %v921_v8, %v920_v7 }
  0xac   :  { %v873_v13 = vsel %vm727_vm2, %v842_v6, %v872_v12  ;;  %v953_v19 = vsel %vm727_vm2, %v922_v9, %v952_v15 }
  0xad   :  { %v615_v16 = vmax.f32 %v599_v10, 0.0  ;;  %v874_v18 = vsel %vm729_vm3, %v843_v11, %v873_v13  ;;  %v954_v22 = vsel %vm729_vm3, %v923_v14, %v953_v19 }
  0xae   :  { %v398_v20 = vpop.f32.mrf.mxu2  ;;  %896 = vrot.lane.b32.xlu1 %v874_v18, %s3482_s23  ;;  %976 = vrot.lane.b32.xlu0 %v954_v22, %s3483_s24  ;;  %v173_v24 = vpop.f32.mrf.mxu0 }
  0xaf   :  { %v544_v21 = vpop.f32.mrf.mxu3  ;;  %v434_v23 = vadd.f32 %v398_v20, %v268_v17  ;;  %v270_v25 = vpop.f32.mrf.mxu1  ;;  %v651_v27 = vrot.slane %v615_v16, 2  ;;  %v652_v28 = vrot.slane %v615_v16, 4  ;;  %v653_v29 = vrot.slane %v615_v16, 6 }
  0xb0   :  { %v764_v31 = vperm.slane %v615_v16, 1  ;;  %v697_v34 = vperm.slane %v615_v16, 0  ;;  %v271_v38 = vadd.f32 %v270_v25, %v173_v24 }
  0xb1   :  { %v580_v30 = vadd.f32 %v544_v21, %v434_v23  ;;  %v765_v32 = vperm.slane %v651_v27, 1  ;;  %v766_v33 = vperm.slane %v652_v28, 1  ;;  %v698_v35 = vperm.slane %v651_v27, 0 }
  0xb2   :  { %v699_v36 = vperm.slane %v652_v28, 0  ;;  %v767_v39 = vperm.slane %v653_v29, 1  ;;  %v700_v42 = vperm.slane %v653_v29, 0 }
  0xb3   :  { %v600_v37 = vadd.f32 %v3736_v26, %v580_v30  ;;  %v795_v40 = vsel %vm725_vm1, %v765_v32, %v764_v31  ;;  %v731_v43 = vsel %vm725_vm1, %v698_v35, %v697_v34 }
  0xb4   :  { %v796_v41 = vsel %vm727_vm2, %v766_v33, %v795_v40  ;;  %v732_v46 = vsel %vm727_vm2, %v699_v36, %v731_v43 }
  0xb5   :  { %v616_v44 = vmax.f32 %v600_v37, 0.0  ;;  %v797_v45 = vsel %vm729_vm3, %v767_v39, %v796_v41  ;;  %v3765_v49 = vsel %vm729_vm3, %v700_v42, %v732_v46 }
  0xb6   :  { %v401_v47 = vpop.f32.mrf.mxu2  ;;  %818 = vrot.lane.b32.xlu0 %v797_v45, %s3481_s2  ;;  %v175_v51 = vpop.f32.mrf.mxu0 }
  0xb7   :  { %v547_v48 = vpop.f32.mrf.mxu3  ;;  %v435_v50 = vadd.f32 %v401_v47, %v271_v38  ;;  %v272_v52 = vpop.f32.mrf.mxu1  ;;  %v654_v53 = vrot.slane %v616_v44, 2  ;;  %v655_v54 = vrot.slane %v616_v44, 4  ;;  %v656_v55 = vrot.slane %v616_v44, 6 }
  0xb8   :  { %v844_v57 = vperm.slane %v616_v44, 0  ;;  %v924_v61 = vperm.slane %v616_v44, 1  ;;  %v273_v7 = vadd.f32 %v272_v52, %v175_v51 }
  0xb9   :  { %v581_v56 = vadd.f32 %v547_v48, %v435_v50  ;;  %v845_v58 = vperm.slane %v654_v53, 0  ;;  %v846_v59 = vperm.slane %v655_v54, 0  ;;  %v925_v62 = vperm.slane %v654_v53, 1 }
  0xba   :  { %v926_v63 = vperm.slane %v655_v54, 1  ;;  %v847_v1 = vperm.slane %v656_v55, 0  ;;  %v927_v4 = vperm.slane %v656_v55, 1 }
  0xbb   :  { %v601_v0 = vadd.f32 %v3736_v26, %v581_v56  ;;  %v875_v2 = vsel %vm725_vm1, %v845_v58, %v844_v57  ;;  %v955_v5 = vsel %vm725_vm1, %v925_v62, %v924_v61 }
  0xbc   :  { %v876_v3 = vsel %vm727_vm2, %v846_v59, %v875_v2  ;;  %v956_v9 = vsel %vm727_vm2, %v926_v63, %v955_v5 }
  0xbd   :  { %v617_v6 = vmax.f32 %v601_v0, 0.0  ;;  %v877_v8 = vsel %vm729_vm3, %v847_v1, %v876_v3  ;;  %v957_v12 = vsel %vm729_vm3, %v927_v4, %v956_v9 }
  0xbe   :  { %v403_v10 = vpop.f32.mrf.mxu2  ;;  %898 = vrot.lane.b32.xlu2 %v877_v8, %s3482_s23  ;;  %978 = vrot.lane.b32.xlu1 %v957_v12, %s3483_s24  ;;  %v178_v14 = vpop.f32.mrf.mxu0 }
  0xbf   :  { %v549_v11 = vpop.f32.mrf.mxu3  ;;  %v436_v13 = vadd.f32 %v403_v10, %v273_v7  ;;  %v275_v15 = vpop.f32.mrf.mxu1  ;;  %v657_v16 = vrot.slane %v617_v6, 2  ;;  %v658_v17 = vrot.slane %v617_v6, 4  ;;  %v659_v18 = vrot.slane %v617_v6, 6 }
  0xc0   :  { %v768_v20 = vperm.slane %v617_v6, 1  ;;  %v701_v23 = vperm.slane %v617_v6, 0  ;;  %v276_v28 = vadd.f32 %v275_v15, %v178_v14 }
  0xc1   :  { %v582_v19 = vadd.f32 %v549_v11, %v436_v13  ;;  %v769_v21 = vperm.slane %v657_v16, 1  ;;  %v770_v22 = vperm.slane %v658_v17, 1  ;;  %v702_v24 = vperm.slane %v657_v16, 0 }
  0xc2   :  { %v703_v25 = vperm.slane %v658_v17, 0  ;;  %v771_v29 = vperm.slane %v659_v18, 1  ;;  %v704_v32 = vperm.slane %v659_v18, 0 }
  0xc3   :  { %v602_v27 = vadd.f32 %v3736_v26, %v582_v19  ;;  %v798_v30 = vsel %vm725_vm1, %v769_v21, %v768_v20  ;;  %v734_v33 = vsel %vm725_vm1, %v702_v24, %v701_v23 }
  0xc4   :  { %v799_v31 = vsel %vm727_vm2, %v770_v22, %v798_v30  ;;  %v735_v36 = vsel %vm727_vm2, %v703_v25, %v734_v33 }
  0xc5   :  { %v618_v34 = vmax.f32 %v602_v27, 0.0  ;;  %v800_v35 = vsel %vm729_vm3, %v771_v29, %v799_v31  ;;  %v3784_v39 = vsel %vm729_vm3, %v704_v32, %v735_v36 }
  0xc6   :  { %v406_v37 = vpop.f32.mrf.mxu2  ;;  %820 = vrot.lane.b32.xlu1 %v800_v35, %s3481_s2  ;;  %v3787_v41 = vpop.f32.mrf.mxu0 }
  0xc7   :  { %v552_v38 = vpop.f32.mrf.mxu3  ;;  %v437_v40 = vadd.f32 %v406_v37, %v276_v28  ;;  %v3789_v42 = vpop.f32.mrf.mxu1  ;;  %v660_v43 = vrot.slane %v618_v34, 2  ;;  %v661_v44 = vrot.slane %v618_v34, 4  ;;  %v662_v45 = vrot.slane %v618_v34, 6 }
  0xc8   :  { %v848_v47 = vperm.slane %v618_v34, 0  ;;  %v928_v58 = vperm.slane %v618_v34, 1 }
  0xc9   :  { %v583_v46 = vadd.f32 %v552_v38, %v437_v40  ;;  %v849_v48 = vperm.slane %v660_v43, 0  ;;  %v850_v50 = vperm.slane %v661_v44, 0  ;;  %v851_v52 = vperm.slane %v662_v45, 0 }
  0xca   :  { %v929_v54 = vperm.slane %v660_v43, 1  ;;  %v930_v62 = vperm.slane %v661_v44, 1  ;;  %v931_v10 = vperm.slane %v662_v45, 1 }
  0xcb   :  { %v603_v51 = vadd.f32 %v3736_v26, %v583_v46  ;;  %v878_v53 = vsel %vm725_vm1, %v849_v48, %v848_v47 }
  0xcc   :  { %v879_v55 = vsel %vm727_vm2, %v850_v50, %v878_v53  ;;  %v958_v1 = vsel %vm725_vm1, %v929_v54, %v928_v58 }
  0xcd   :  { %v3794_v56 = vmax.f32 %v603_v51, 0.0  ;;  %v880_v57 = vsel %vm729_vm3, %v851_v52, %v879_v55  ;;  %v959_v5 = vsel %vm727_vm2, %v930_v62, %v958_v1 }
  0xce   :  { %v3797_v59 = vpop.f32.mrf.mxu2  ;;  %900 = vrot.lane.b32.xlu2 %v880_v57, %s3482_s23  ;;  %v183_v63 = vpop.f32.mrf.mxu0  ;;  %v960_v13 = vsel %vm729_vm3, %v931_v10, %v959_v5 }
  0xcf   :  { %v3799_v61 = vpop.f32.mrf.mxu3  ;;  %v280_v0 = vpop.f32.mrf.mxu1  ;;  %v663_v2 = vrot.slane %v3794_v56, 2  ;;  %v664_v3 = vrot.slane %v3794_v56, 4  ;;  %v665_v4 = vrot.slane %v3794_v56, 6  ;;  %v705_v6 = vperm.slane %v3794_v56, 0 }
  0xd0   :  { %v281_v9 = vadd.f32 %v280_v0, %v183_v63 }
  0xd1   :  { %v706_v7 = vperm.slane %v663_v2, 0  ;;  %v707_v8 = vperm.slane %v664_v3, 0  ;;  %v708_v11 = vperm.slane %v665_v4, 0 }
  0xd3   :  { %v737_v12 = vsel %vm725_vm1, %v706_v7, %v705_v6 }
  0xd4   :  { %v738_v14 = vsel %vm727_vm2, %v707_v8, %v737_v12 }
  0xd5   :  { %v3819_v17 = vsel %vm729_vm3, %v708_v11, %v738_v14 }
  0xd6   :  { %v411_v15 = vpop.f32.mrf.mxu2  ;;  %980 = vrot.lane.b32.xlu2 %v960_v13, %s3483_s24  ;;  %v185_v19 = vpop.f32.mrf.mxu0 }
  0xd7   :  { %v557_v16 = vpop.f32.mrf.mxu3  ;;  %v439_v18 = vadd.f32 %v411_v15, %v281_v9  ;;  %v282_v20 = vpop.f32.mrf.mxu1 }
  0xd8   :  { %v283_v24 = vadd.f32 %v282_v20, %v185_v19 }
  0xd9   :  { %v585_v21 = vadd.f32 %v557_v16, %v439_v18 }
  0xdb   :  { %v605_v22 = vadd.f32 %v3736_v26, %v585_v21 }
  0xdd   :  { %v621_v23 = vmax.f32 %v605_v22, 0.0 }
  0xde   :  { %v413_v25 = vpop.f32.mrf.mxu2  ;;  %v188_v29 = vpop.f32.mrf.mxu0 }
  0xdf   :  { %v559_v27 = vpop.f32.mrf.mxu3  ;;  %v440_v28 = vadd.f32 %v413_v25, %v283_v24  ;;  %v285_v30 = vpop.f32.mrf.mxu1  ;;  %v669_v31 = vrot.slane %v621_v23, 2  ;;  %v670_v32 = vrot.slane %v621_v23, 4  ;;  %v671_v33 = vrot.slane %v621_v23, 6 }
  0xe0   :  { %v776_v35 = vperm.slane %v621_v23, 1  ;;  %v709_v38 = vperm.slane %v621_v23, 0  ;;  %v286_v45 = vadd.f32 %v285_v30, %v188_v29 }
  0xe1   :  { %v586_v34 = vadd.f32 %v559_v27, %v440_v28  ;;  %v777_v36 = vperm.slane %v669_v31, 1  ;;  %v778_v37 = vperm.slane %v670_v32, 1  ;;  %v710_v40 = vperm.slane %v669_v31, 0 }
  0xe2   :  { %v711_v43 = vperm.slane %v670_v32, 0  ;;  %v779_v46 = vperm.slane %v671_v33, 1  ;;  %v712_v50 = vperm.slane %v671_v33, 0  ;;  %v278_v32 = vadd.f32 %v3789_v42, %v3787_v41 }
  0xe3   :  { %v606_v44 = vadd.f32 %v3736_v26, %v586_v34  ;;  %v804_v47 = vsel %vm725_vm1, %v777_v36, %v776_v35  ;;  %v740_v51 = vsel %vm725_vm1, %v710_v40, %v709_v38 }
  0xe4   :  { %v805_v48 = vsel %vm727_vm2, %v778_v37, %v804_v47  ;;  %v741_v54 = vsel %vm727_vm2, %v711_v43, %v740_v51 }
  0xe5   :  { %v622_v52 = vmax.f32 %v606_v44, 0.0  ;;  %v806_v53 = vsel %vm729_vm3, %v779_v46, %v805_v48  ;;  %v3830_v58 = vsel %vm729_vm3, %v712_v50, %v741_v54  ;;  %v438_v50 = vadd.f32 %v3797_v59, %v278_v32 }
  0xe6   :  { %v416_v55 = vpop.f32.mrf.mxu2  ;;  %824 = vrot.lane.b32.xlu0 %v806_v53, %s3481_s2  ;;  %v190_v63 = vpop.f32.mrf.mxu0 }
  0xe7   :  { %v562_v57 = vpop.f32.mrf.mxu3  ;;  %v441_v62 = vadd.f32 %v416_v55, %v286_v45  ;;  %v287_v0 = vpop.f32.mrf.mxu1  ;;  %v672_v1 = vrot.slane %v622_v52, 2  ;;  %v673_v5 = vrot.slane %v622_v52, 4  ;;  %v674_v6 = vrot.slane %v622_v52, 6 }
  0xe8   :  { %v856_v8 = vperm.slane %v622_v52, 0  ;;  %v936_v16 = vperm.slane %v622_v52, 1  ;;  %v288_v19 = vadd.f32 %v287_v0, %v190_v63 }
  0xe9   :  { %v587_v7 = vadd.f32 %v562_v57, %v441_v62  ;;  %v857_v9 = vperm.slane %v672_v1, 0  ;;  %v858_v10 = vperm.slane %v673_v5, 0  ;;  %v937_v11 = vperm.slane %v672_v1, 1 }
  0xea   :  { %v859_v13 = vperm.slane %v674_v6, 0  ;;  %v938_v23 = vperm.slane %v673_v5, 1  ;;  %v939_v33 = vperm.slane %v674_v6, 1 }
  0xeb   :  { %v607_v12 = vadd.f32 %v3736_v26, %v587_v7  ;;  %v884_v14 = vsel %vm725_vm1, %v857_v9, %v856_v8  ;;  %v964_v24 = vsel %vm725_vm1, %v937_v11, %v936_v16  ;;  %v584_v8 = vadd.f32 %v3799_v61, %v438_v50 }
  0xec   :  { %v885_v15 = vsel %vm727_vm2, %v858_v10, %v884_v14  ;;  %v965_v38 = vsel %vm727_vm2, %v938_v23, %v964_v24 }
  0xed   :  { %v623_v18 = vmax.f32 %v607_v12, 0.0  ;;  %v886_v20 = vsel %vm729_vm3, %v859_v13, %v885_v15  ;;  %v966_v53 = vsel %vm729_vm3, %v939_v33, %v965_v38 }
  0xee   :  { %v418_v21 = vpop.f32.mrf.mxu2  ;;  %904 = vrot.lane.b32.xlu2 %v886_v20, %s3482_s23  ;;  %v193_v27 = vpop.f32.mrf.mxu0 }
  0xef   :  { %v564_v22 = vpop.f32.mrf.mxu3  ;;  %v442_v25 = vadd.f32 %v418_v21, %v288_v19  ;;  %v290_v28 = vpop.f32.mrf.mxu1  ;;  %v675_v29 = vrot.slane %v623_v18, 2  ;;  %v676_v30 = vrot.slane %v623_v18, 4  ;;  %v677_v31 = vrot.slane %v623_v18, 6 }
  0xf0   :  { %v780_v35 = vperm.slane %v623_v18, 1  ;;  %v713_v40 = vperm.slane %v623_v18, 0  ;;  %v291_v46 = vadd.f32 %v290_v28, %v193_v27  ;;  %v604_v18 = vadd.f32 %v3736_v26, %v584_v8 }
  0xf1   :  { %v588_v34 = vadd.f32 %v564_v22, %v442_v25  ;;  %v781_v36 = vperm.slane %v675_v29, 1  ;;  %v782_v37 = vperm.slane %v676_v30, 1  ;;  %v714_v43 = vperm.slane %v675_v29, 0 }
  0xf2   :  { %v715_v44 = vperm.slane %v676_v30, 0  ;;  %v783_v47 = vperm.slane %v677_v31, 1  ;;  %v716_v42 = vperm.slane %v677_v31, 0  ;;  %v773_v21 = vperm.slane %v663_v2, 1 }
  0xf3   :  { %v608_v45 = vadd.f32 %v3736_v26, %v588_v34  ;;  %v807_v48 = vsel %vm725_vm1, %v781_v36, %v780_v35  ;;  %v743_v51 = vsel %vm725_vm1, %v714_v43, %v713_v40  ;;  %v772_v29 = vperm.slane %v3794_v56, 1 }
  0xf4   :  { %v808_v41 = vsel %vm727_vm2, %v782_v37, %v807_v48  ;;  %v744_v55 = vsel %vm727_vm2, %v715_v44, %v743_v51  ;;  %v3865_v2 = vmax.f32 %v604_v18, 0.0  ;;  %v774_v37 = vperm.slane %v664_v3, 1 }
  0xf5   :  { %v624_v52 = vmax.f32 %v608_v45, 0.0  ;;  %v809_v54 = vsel %vm729_vm3, %v783_v47, %v808_v41  ;;  %v3852_v59 = vsel %vm729_vm3, %v716_v42, %v744_v55  ;;  %v801_v38 = vsel %vm725_vm1, %v773_v21, %v772_v29 }
  0xf6   :  { %v421_v57 = vpop.f32.mrf.mxu2  ;;  %984 = vrot.lane.b32.xlu2 %v966_v53, %s3483_s24  ;;  %826 = vrot.lane.b32.xlu1 %v809_v54, %s3481_s2  ;;  %v195_v0 = vpop.f32.mrf.mxu0  ;;  %v802_v3 = vsel %vm727_vm2, %v774_v37, %v801_v38  ;;  %v668_v18 = vrot.slane %v3865_v2, 6  ;;  %v932_v56 = vperm.slane %v3865_v2, 1  ;;  %v852_v37 = vperm.slane %v3865_v2, 0 }
  0xf7   :  { %v567_v62 = vpop.f32.mrf.mxu3  ;;  %v443_v63 = vadd.f32 %v421_v57, %v291_v46  ;;  %v292_v1 = vpop.f32.mrf.mxu1  ;;  %v678_v5 = vrot.slane %v624_v52, 2  ;;  %v679_v6 = vrot.slane %v624_v52, 4  ;;  %v680_v7 = vrot.slane %v624_v52, 6 }
  0xf8   :  { %v860_v10 = vperm.slane %v624_v52, 0  ;;  %v940_v20 = vperm.slane %v624_v52, 1  ;;  %v293_v61 = vadd.f32 %v292_v1, %v195_v0 }
  0xf9   :  { %v589_v9 = vadd.f32 %v567_v62, %v443_v63  ;;  %v861_v11 = vperm.slane %v678_v5, 0  ;;  %v862_v12 = vperm.slane %v679_v6, 0  ;;  %v941_v13 = vperm.slane %v678_v5, 1 }
  0xfa   :  { %v863_v15 = vperm.slane %v680_v7, 0  ;;  %v942_v27 = vperm.slane %v679_v6, 1  ;;  %v943_v36 = vperm.slane %v680_v7, 1  ;;  %v775_v6 = vperm.slane %v665_v4, 1 }
  0xfb   :  { %v609_v14 = vadd.f32 %v3736_v26, %v589_v9  ;;  %v887_v16 = vsel %vm725_vm1, %v861_v11, %v860_v10  ;;  %v967_v28 = vsel %vm725_vm1, %v941_v13, %v940_v20  ;;  %v666_v7 = vrot.slane %v3865_v2, 2 }
  0xfc   :  { %v888_v19 = vsel %vm727_vm2, %v862_v12, %v887_v16  ;;  %v968_v46 = vsel %vm727_vm2, %v942_v27, %v967_v28  ;;  %v667_v16 = vrot.slane %v3865_v2, 4 }
  0xfd   :  { %v625_v22 = vmax.f32 %v609_v14, 0.0  ;;  %v889_v23 = vsel %vm729_vm3, %v863_v15, %v888_v19  ;;  %v969_v63 = vsel %vm729_vm3, %v943_v36, %v968_v46  ;;  %v803_v15 = vsel %vm729_vm3, %v775_v6, %v802_v3 }
  0xfe   :  { %v423_v24 = vpop.f32.mrf.mxu2  ;;  %906 = vrot.lane.b32.xlu0 %v889_v23, %s3482_s23  ;;  %v198_v31 = vpop.f32.mrf.mxu0  ;;  %v854_v46 = vperm.slane %v667_v16, 0 }
  0xff   :  { %v569_v25 = vpop.f32.mrf.mxu3  ;;  %v444_v30 = vadd.f32 %v423_v24, %v293_v61  ;;  %v295_v32 = vpop.f32.mrf.mxu1  ;;  %v681_v33 = vrot.slane %v625_v22, 2  ;;  %v682_v34 = vrot.slane %v625_v22, 4  ;;  %v683_v35 = vrot.slane %v625_v22, 6 }
 0x100   :  { %v784_v43 = vperm.slane %v625_v22, 1  ;;  %v717_v47 = vperm.slane %v625_v22, 0  ;;  %v296_v42 = vadd.f32 %v295_v32, %v198_v31  ;;  %v933_v24 = vperm.slane %v666_v7, 1 }
 0x101   :  { %v590_v40 = vadd.f32 %v569_v25, %v444_v30  ;;  %v785_v44 = vperm.slane %v681_v33, 1  ;;  %v786_v45 = vperm.slane %v682_v34, 1  ;;  %v718_v48 = vperm.slane %v681_v33, 0 }
 0x102   :  { %v719_v50 = vperm.slane %v682_v34, 0  ;;  %v787_v51 = vperm.slane %v683_v35, 1  ;;  %v720_v54 = vperm.slane %v683_v35, 0  ;;  %v853_v33 = vperm.slane %v666_v7, 0 }
 0x103   :  { %v610_v41 = vadd.f32 %v3736_v26, %v590_v40  ;;  %v810_v52 = vsel %vm725_vm1, %v785_v44, %v784_v43  ;;  %v746_v55 = vsel %vm725_vm1, %v718_v48, %v717_v47  ;;  %v934_v44 = vperm.slane %v667_v16, 1 }
 0x104   :  { %v811_v53 = vsel %vm727_vm2, %v786_v45, %v810_v52  ;;  %v747_v0 = vsel %vm727_vm2, %v719_v50, %v746_v55  ;;  %v961_v45 = vsel %vm725_vm1, %v933_v24, %v932_v56 }
 0x105   :  { %v626_v57 = vmax.f32 %v610_v41, 0.0  ;;  %v812_v62 = vsel %vm729_vm3, %v787_v51, %v811_v53  ;;  %v3885_v8 = vsel %vm729_vm3, %v720_v54, %v747_v0  ;;  %v881_v41 = vsel %vm725_vm1, %v853_v33, %v852_v37 }
 0x106   :  { %v426_v1 = vpop.f32.mrf.mxu2  ;;  %828 = vrot.lane.b32.xlu1 %v812_v62, %s3481_s2  ;;  %986 = vrot.lane.b32.xlu0 %v969_v63, %s3483_s24  ;;  %v200_v13 = vpop.f32.mrf.mxu0  ;;  %v962_v54 = vsel %vm727_vm2, %v934_v44, %v961_v45  ;;  %v882_v62 = vsel %vm727_vm2, %v854_v46, %v881_v41  ;;  %v855_v0 = vperm.slane %v668_v18, 0 }
 0x107   :  { %v572_v5 = vpop.f32.mrf.mxu3  ;;  %v445_v9 = vadd.f32 %v426_v1, %v296_v42  ;;  %v684_v10 = vrot.slane %v626_v57, 2  ;;  %v685_v11 = vrot.slane %v626_v57, 4  ;;  %v686_v12 = vrot.slane %v626_v57, 6  ;;  %v297_v14 = vpop.f32.mrf.mxu1 }
 0x108   :  { %v944_v19 = vperm.slane %v626_v57, 1  ;;  %v864_v22 = vperm.slane %v626_v57, 0  ;;  %v298_v27 = vadd.f32 %v297_v14, %v200_v13  ;;  %v935_v57 = vperm.slane %v668_v18, 1 }
 0x109   :  { %v591_v4 = vadd.f32 %v572_v5, %v445_v9  ;;  %v945_v20 = vperm.slane %v684_v10, 1  ;;  %v946_v21 = vperm.slane %v685_v11, 1  ;;  %v865_v61 = vperm.slane %v684_v10, 0 }
 0x10a   :  { %v866_v23 = vperm.slane %v685_v11, 0  ;;  %v947_v28 = vperm.slane %v686_v12, 1  ;;  %v867_v31 = vperm.slane %v686_v12, 0  ;;  %v963_v6 = vsel %vm729_vm3, %v935_v57, %v962_v54 }
 0x10b   :  { %v611_v25 = vadd.f32 %v3736_v26, %v591_v4  ;;  %v970_v29 = vsel %vm725_vm1, %v945_v20, %v944_v19  ;;  %v890_v32 = vsel %vm725_vm1, %v865_v61, %v864_v22  ;;  %v883_v9 = vsel %vm729_vm3, %v855_v0, %v882_v62 }
 0x10c   :  { %v971_v30 = vsel %vm727_vm2, %v946_v21, %v970_v29  ;;  %v891_v36 = vsel %vm727_vm2, %v866_v23, %v890_v32 }
 0x10d   :  { %v3895_v34 = vmax.f32 %v611_v25, 0.0  ;;  %v972_v35 = vsel %vm729_vm3, %v947_v28, %v971_v30  ;;  %v892_v40 = vsel %vm729_vm3, %v867_v31, %v891_v36 }
 0x10e   :  { %v428_v38 = vpop.f32.mrf.mxu2  ;;  %988 = vrot.lane.b32.xlu2 %v972_v35, %s3483_s24  ;;  %822 = vrot.lane.b32.xlu0 %v803_v15, %s3481_s2 }
 0x10f   :  { %v574_v43 = vpop.f32.mrf.mxu3  ;;  %v446_v47 = vadd.f32 %v428_v38, %v298_v27  ;;  %908 = vrot.lane.b32.xlu1 %v892_v40, %s3482_s23  ;;  %v687_v48 = vrot.slane %v3895_v34, 2  ;;  %v688_v50 = vrot.slane %v3895_v34, 4  ;;  %v689_v2 = vrot.slane %v3895_v34, 6 }
 0x110   :  { %v788_v42 = vperm.slane %v3895_v34, 1 }
 0x111   :  { %v592_v51 = vadd.f32 %v574_v43, %v446_v47  ;;  %v789_v52 = vperm.slane %v687_v48, 1  ;;  %v790_v53 = vperm.slane %v688_v50, 1  ;;  %v791_v3 = vperm.slane %v689_v2, 1 }
 0x113   :  { %v612_v55 = vadd.f32 %v3736_v26, %v592_v51  ;;  %v813_v63 = vsel %vm725_vm1, %v789_v52, %v788_v42  ;;  %v721_v51 = vperm.slane %v3895_v34, 0  ;;  %v722_v52 = vperm.slane %v687_v48, 0  ;;  %v3323_v48 = vld [vmem:[%s4515_s3 + $0x38] sm:$0xff] }
 0x114   :  { %v814_v1 = vsel %vm727_vm2, %v790_v53, %v813_v63  ;;  %v724_v53 = vperm.slane %v689_v2, 0  ;;  %1284 = vmatpush.bf16.msrb.mxu1 %v3323_v48  ;;  %v3321_v2 = vld [vmem:[%s4515_s3 + $0x28] sm:$0xff] }
 0x115   :  { %v628_v5 = vmax.f32 %v612_v55, 0.0  ;;  %v815_v7 = vsel %vm729_vm3, %v791_v3, %v814_v1  ;;  %v749_v3 = vsel %vm725_vm1, %v722_v52, %v721_v51  ;;  %v3327_v51 = vld [vmem:[%s4515_s3 + $0x58] sm:$0xff]  ;;  %v3326_v52 = vld [vmem:[%s4515_s3 + $0x50] sm:$0xff]  ;;  %v3325_v48 = vld [vmem:[%s4515_s3 + $0x48] sm:$0xff] }
 0x116   :  { %982 = vrot.lane.b32.xlu2 %v963_v6, %s3483_s24  ;;  %830 = vrot.lane.b32.xlu0 %v815_v7, %s3481_s2  ;;  %v3320_v6 = vld [vmem:[%s4515_s3 + $0x20] sm:$0xff] }
 0x117   :  { %902 = vrot.lane.b32.xlu1 %v883_v9, %s3482_s23  ;;  %v690_v26 = vrot.slane %v628_v5, 2  ;;  %v691_v10 = vrot.slane %v628_v5, 4  ;;  %v692_v11 = vrot.slane %v628_v5, 6  ;;  %v868_v12 = vperm.slane %v628_v5, 0 }
 0x118   :  { %v817_v13 = vpop.permute.xlu0 %816  ;;  %v948_v14 = vperm.slane %v628_v5, 1  ;;  %v899_v33 = vpop.permute.xlu2 %898 }
 0x119   :  { %v869_v15 = vperm.slane %v690_v26, 0  ;;  %v870_v16 = vperm.slane %v691_v10, 0  ;;  %v871_v18 = vperm.slane %v692_v11, 0  ;;  %v949_v56 = vperm.slane %v690_v26, 1 }
 0x11a   :  { %v950_v4 = vperm.slane %v691_v10, 1  ;;  %v951_v19 = vperm.slane %v692_v11, 1  ;;  %v1001_v25 = vsel %vm1000_vm4, %v3747_v60, %v817_v13  ;;  %v3319_v10 = vld [vmem:[%s4515_s3 + $0x18] sm:$0xff]  ;;  %v3317_v11 = vld [vmem:[%s4515_s3 + $0x8] sm:$0xff] }
 0x11b   :  { %v893_v20 = vsel %vm725_vm1, %v869_v15, %v868_v12  ;;  %v973_v22 = vsel %vm725_vm1, %v949_v56, %v948_v14  ;;  %v3316_v12 = vld [vmem:[%s4515_s3] sm:$0xff] }
 0x11c   :  { %v894_v21 = vsel %vm727_vm2, %v870_v16, %v893_v20  ;;  %v974_v23 = vsel %vm727_vm2, %v950_v4, %v973_v22 }
 0x11d   :  { %v895_v61 = vsel %vm729_vm3, %v871_v18, %v894_v21  ;;  %v975_v24 = vsel %vm729_vm3, %v951_v19, %v974_v23 }
 0x11e   :  { %990 = vrot.lane.b32.xlu2 %v975_v24, %s3483_s24 }
 0x11f   :  { %910 = vrot.lane.b32.xlu1 %v895_v61, %s3482_s23 }
 0x120   :  { %v897_v27 = vpop.permute.xlu1 %896  ;;  %v977_v29 = vpop.permute.xlu0 %976 }
 0x121   :  { %v1009_v28 = vsel %vm129_vm0, %v1001_v25, %v897_v27 }
 0x122   :  { %v3939_v30 = vsel %vm1017_vm5, %v1009_v28, %v977_v29 }
 0x123   :  { %v1032_v31 = vrot.slane %v3939_v30, 1  ;;  %v1033_v32 = vrot.slane %v3939_v30, 2  ;;  %1060 = vst [vmem:[#allocation1] ss:$9 sm:$0xff] %v3939_v30 }
 0x125   :  { %1062 = vst [vmem:[#allocation1 + $0x1] ss:$9 sm:$0xff] %v1032_v31 }
 0x126   :  { %1064 = vst [vmem:[#allocation1 + $0x2] ss:$9 sm:$0xff] %v1033_v32 }
 0x128   :  { %v819_v35 = vpop.permute.xlu0 %818  ;;  %v901_v36 = vpop.permute.xlu2 %900 }
 0x129   :  { %v1002_v60 = vsel %vm1000_vm4, %v3765_v49, %v819_v35  ;;  %v3331_v35 = vld [vmem:[%s4515_s3 + $0x78] sm:$0xff] }
 0x12a   :  { %v1010_v38 = vsel %vm129_vm0, %v1002_v60, %v899_v33  ;;  %1218 = vmatpush.bf16.msrb.mxu0 %v3331_v35  ;;  %v3330_v60 = vld [vmem:[%s4515_s3 + $0x70] sm:$0xff] }
 0x12e   :  { %1219 = vmatpush.bf16.msrb.mxu0 %v3330_v60  ;;  %v3341_v60 = vld [vmem:[%s4515_s3 + $0xc8] sm:$0xff] }
 0x130   :  { %v979_v37 = vpop.permute.xlu1 %978  ;;  %v981_v46 = vpop.permute.xlu2 %980 }
 0x131   :  { %v3948_v40 = vsel %vm1017_vm5, %v1010_v38, %v979_v37 }
 0x132   :  { %v1034_v43 = vrot.slane %v3948_v40, 1  ;;  %v1035_v44 = vrot.slane %v3948_v40, 2  ;;  %1066 = vst [vmem:[#allocation1 + $0x3] ss:$9 sm:$0xff] %v3948_v40 }
 0x134   :  { %1068 = vst [vmem:[#allocation1 + $0x4] ss:$9 sm:$0xff] %v1034_v43 }
 0x135   :  { %1070 = vst [vmem:[#allocation1 + $0x5] ss:$9 sm:$0xff] %v1035_v44 }
 0x138   :  { %v821_v49 = vpop.permute.xlu1 %820 }
 0x139   :  { %v1003_v45 = vsel %vm1000_vm4, %v3784_v39, %v821_v49  ;;  %v723_v39 = vperm.slane %v688_v50, 0  ;;  %v3322_v50 = vld [vmem:[%s4515_s3 + $0x30] sm:$0xff]  ;;  %v3328_v49 = vld [vmem:[%s4515_s3 + $0x60] sm:$0xff] }
 0x13a   :  { %v1011_v47 = vsel %vm129_vm0, %v1003_v45, %v901_v36  ;;  %1285 = vmatpush.bf16.msrb.mxu1 %v3322_v50  ;;  %v3346_v50 = vld [vmem:[%s4515_s3 + $0xf0] sm:$0xff] }
 0x13b   :  { %v3961_v41 = vsel %vm1017_vm5, %v1011_v47, %v981_v46  ;;  %v750_v54 = vsel %vm727_vm2, %v723_v39, %v749_v3 }
 0x13c   :  { %v1036_v42 = vrot.slane %v3961_v41, 1  ;;  %1072 = vst [vmem:[#allocation1 + $0x6] ss:$9 sm:$0xff] %v3961_v41  ;;  %v1037_v55 = vrot.slane %v3961_v41, 2  ;;  %v3978_v57 = vsel %vm729_vm3, %v724_v53, %v750_v54  ;;  %v3339_v54 = vld [vmem:[%s4515_s3 + $0xb8] sm:$0xff] }
 0x13d   :  { %1406 = vmatpush.bf16.msrb.mxu2 %v3339_v54 }
 0x13e   :  { %1074 = vst [vmem:[#allocation1 + $0x7] ss:$9 sm:$0xff] %v1036_v42  ;;  %1286 = vmatpush.bf16.msrb.mxu1 %v3321_v2  ;;  %v3324_v2 = vld [vmem:[%s4515_s3 + $0x40] sm:$0xff] }
 0x142   :  { %1287 = vmatpush.bf16.msrb.mxu1 %v3320_v6  ;;  %v3345_v6 = vld [vmem:[%s4515_s3 + $0xe8] sm:$0xff] }
 0x145   :  { %v1075_v62 = vld [vmem:[#allocation1] sm:$0xff] }
 0x146   :  { %1076 = vst [vmem:[#allocation1] ss:$9 sm:$0xff] %v1037_v55  ;;  %1288 = vmatpush.bf16.msrb.mxu1 %v3319_v10 }
 0x148   :  { %v905_v34 = vpop.permute.xlu2 %904 }
 0x150   :  { %v985_v1 = vpop.permute.xlu2 %984 }
 0x158   :  { %v825_v63 = vpop.permute.xlu0 %824 }
 0x159   :  { %v1005_v0 = vsel %vm1000_vm4, %v3830_v58, %v825_v63  ;;  %v3318_v58 = vld [vmem:[%s4515_s3 + $0x10] sm:$0xff]  ;;  %v3337_v63 = vld [vmem:[%s4515_s3 + $0xa8] sm:$0xff] }
 0x15a   :  { %v1013_v5 = vsel %vm129_vm0, %v1005_v0, %v905_v34  ;;  %1289 = vmatpush.bf16.msrb.mxu1 %v3318_v58  ;;  %v3338_v34 = vld [vmem:[%s4515_s3 + $0xb0] sm:$0xff] }
 0x15b   :  { %v1022_v7 = vsel %vm1017_vm5, %v1013_v5, %v985_v1  ;;  %1407 = vmatpush.bf16.msrb.mxu2 %v3338_v34 }
 0x15c   :  { %v1038_v9 = vrot.slane %v1022_v7, 1  ;;  %v1039_v26 = vrot.slane %v1022_v7, 2  ;;  %1077 = vst [vmem:[#allocation1 + $0x1] ss:$9 sm:$0xff] %v1022_v7 }
 0x15e   :  { %1078 = vst [vmem:[#allocation1 + $0x2] ss:$9 sm:$0xff] %v1038_v9  ;;  %1290 = vmatpush.bf16.msrb.mxu1 %v3317_v11  ;;  %v3335_v9 = vld [vmem:[%s4515_s3 + $0x98] sm:$0xff]  ;;  %v3334_v11 = vld [vmem:[%s4515_s3 + $0x90] sm:$0xff] }
 0x15f   :  { %1079 = vst [vmem:[#allocation1 + $0x3] ss:$9 sm:$0xff] %v1039_v26  ;;  %1408 = vmatpush.bf16.msrb.mxu2 %v3337_v63 }
 0x162   :  { %1291 = vmatpush.bf16.msrb.mxu1 %v3316_v12 }
 0x168   :  { %v827_v13 = vpop.permute.xlu1 %826  ;;  %v989_v22 = vpop.permute.xlu2 %988 }
 0x169   :  { %v1006_v15 = vsel %vm1000_vm4, %v3852_v59, %v827_v13  ;;  %v3344_v13 = vld [vmem:[%s4515_s3 + $0xe0] sm:$0xff] }
 0x170   :  { %v907_v14 = vpop.permute.xlu0 %906 }
 0x171   :  { %v1014_v16 = vsel %vm129_vm0, %v1006_v15, %v907_v14  ;;  %v3333_v14 = vld [vmem:[%s4515_s3 + $0x88] sm:$0xff]  ;;  %v3332_v15 = vld [vmem:[%s4515_s3 + $0x80] sm:$0xff] }
 0x178   :  { %v829_v18 = vpop.permute.xlu1 %828  ;;  %v987_v56 = vpop.permute.xlu0 %986 }
 0x179   :  { %v4014_v4 = vsel %vm1017_vm5, %v1014_v16, %v987_v56  ;;  %v1007_v59 = vsel %vm1000_vm4, %v3885_v8, %v829_v18 }
 0x17a   :  { %v1040_v19 = vrot.slane %v4014_v4, 1  ;;  %v1041_v20 = vrot.slane %v4014_v4, 2  ;;  %1080 = vst [vmem:[#allocation1 + $0x4] ss:$9 sm:$0xff] %v4014_v4 }
 0x17c   :  { %1081 = vst [vmem:[#allocation1 + $0x5] ss:$9 sm:$0xff] %v1040_v19 }
 0x17d   :  { %1082 = vst [vmem:[#allocation1 + $0x6] ss:$9 sm:$0xff] %v1041_v20 }
 0x180   :  { %v823_v56 = vpop.permute.xlu0 %822 }
 0x181   :  { %v909_v21 = vpop.permute.xlu1 %908 }
 0x182   :  { %v1015_v61 = vsel %vm129_vm0, %v1007_v59, %v909_v21  ;;  %v1004_v21 = vsel %vm1000_vm4, %v3819_v17, %v823_v56 }
 0x183   :  { %v4027_v23 = vsel %vm1017_vm5, %v1015_v61, %v989_v22 }
 0x184   :  { %1083 = vst [vmem:[#allocation1 + $0x7] ss:$9 sm:$0xff] %v4027_v23  ;;  %v1042_v24 = vrot.slane %v4027_v23, 1  ;;  %v1043_v25 = vrot.slane %v4027_v23, 2 }
 0x189   :  { %v903_v59 = vpop.permute.xlu1 %902 }
 0x18a   :  { %v1012_v22 = vsel %vm129_vm0, %v1004_v21, %v903_v59 }
 0x18b   :  { %v1084_v27 = vld [vmem:[#allocation1] sm:$0xff] }
 0x18c   :  { %1085 = vst [vmem:[#allocation1] ss:$9 sm:$0xff] %v1042_v24  ;;  %v1091_v28 = vpack.c.bf16 %v1084_v27, %v1075_v62  ;;  %v3347_v62 = vld [vmem:[%s4515_s3 + $0xf8] sm:$0xff] }
 0x18d   :  { %1086 = vst [vmem:[#allocation1 + $0x1] ss:$9 sm:$0xff] %v1043_v25  ;;  %1552 = vmatpush.bf16.msrb.mxu3 %v3347_v62  ;;  %v3343_v27 = vld [vmem:[%s4515_s3 + $0xd8] sm:$0xff] }
 0x18e   :  { %1292 = vmatmul.bf16.vlgmr.msrb.gmra.mxu1 %v1091_v28  ;;  %v983_v28 = vpop.permute.xlu2 %982 }
 0x191   :  { %1553 = vmatpush.bf16.msrb.mxu3 %v3346_v50 }
 0x194   :  { %v1087_v8 = vld [vmem:[#allocation1] sm:$0xff] }
 0x195   :  { %1093 = vst [vmem:[#allocation1] sm:$0xff] %v3939_v30  ;;  %v1092_v29 = vpack.c.bf16 %v1087_v8, %v1087_v8  ;;  %v3329_v30 = vld [vmem:[%s4515_s3 + $0x68] sm:$0xff]  ;;  %1554 = vmatpush.bf16.msrb.mxu3 %v3345_v6  ;;  %v1021_v8 = vsel %vm1017_vm5, %v1012_v22, %v983_v28  ;;  %v3370_v28 = vld [vmem:[%s4517_s5 + $0xb0] sm:$0xff] }
 0x196   :  { %1220 = vmatpush.bf16.msrb.mxu0 %v3329_v30  ;;  %v1304_v17 = vrot.slane %v1021_v8, 1  ;;  %v991_v35 = vpop.permute.xlu2 %990 }
 0x199   :  { %1555 = vmatpush.bf16.msrb.mxu3 %v3344_v13 }
 0x19a   :  { %1221 = vmatpush.bf16.msrb.mxu0 %v3328_v49 }
 0x19c   :  { %v1095_v31 = vld [vmem:[#allocation1 + $0x1] ss:$9 sm:$0xff]  ;;  %v1099_v33 = vld [vmem:[#allocation1 + $0x3] ss:$9 sm:$0xff] }
 0x19d   :  { %v1097_v32 = vld [vmem:[#allocation1 + $0x2] ss:$9 sm:$0xff]  ;;  %1556 = vmatpush.bf16.msrb.mxu3 %v3343_v27 }
 0x19e   :  { %1100 = vst [vmem:[#allocation1] sm:$0xff] %v3948_v40  ;;  %1297 = vmatmul.bf16.gmra.mxu1 %v1092_v29  ;;  %1222 = vmatpush.bf16.msrb.mxu0 %v3327_v51  ;;  %v3359_v27 = vld [vmem:[%s4517_s5 + $0x58] sm:$0xff] }
 0x1a2   :  { %1223 = vmatpush.bf16.msrb.mxu0 %v3326_v52 }
 0x1a5   :  { %v1101_v36 = vld [vmem:[#allocation1 + $0x1] ss:$9 sm:$0xff]  ;;  %v1103_v38 = vld [vmem:[#allocation1 + $0x3] ss:$9 sm:$0xff] }
 0x1a6   :  { %v1102_v37 = vld [vmem:[#allocation1 + $0x2] ss:$9 sm:$0xff]  ;;  %1224 = vmatpush.bf16.msrb.mxu0 %v3325_v48 }
 0x1a7   :  { %1104 = vst [vmem:[#allocation1] sm:$0xff] %v3961_v41 }
 0x1aa   :  { %1225 = vmatpush.bf16.msrb.mxu0 %v3324_v2 }
 0x1ae   :  { %v1105_v45 = vld [vmem:[#allocation1 + $0x1] ss:$9 sm:$0xff]  ;;  %v1107_v47 = vld [vmem:[#allocation1 + $0x3] ss:$9 sm:$0xff] }
 0x1af   :  { %v1106_v46 = vld [vmem:[#allocation1 + $0x2] ss:$9 sm:$0xff] }
 0x1b0   :  { %1108 = vst [vmem:[#allocation1] sm:$0xff] %v1022_v7  ;;  %v3336_v7 = vld [vmem:[%s4515_s3 + $0xa0] sm:$0xff] }
 0x1b1   :  { %1409 = vmatpush.bf16.msrb.mxu2 %v3336_v7 }
 0x1b5   :  { %1410 = vmatpush.bf16.msrb.mxu2 %v3335_v9 }
 0x1b7   :  { %v1109_v39 = vld [vmem:[#allocation1 + $0x1] ss:$9 sm:$0xff]  ;;  %v1111_v3 = vld [vmem:[#allocation1 + $0x3] ss:$9 sm:$0xff] }
 0x1b8   :  { %v1110_v53 = vld [vmem:[#allocation1 + $0x2] ss:$9 sm:$0xff] }
 0x1b9   :  { %1112 = vst [vmem:[#allocation1] sm:$0xff] %v4014_v4  ;;  %1411 = vmatpush.bf16.msrb.mxu2 %v3334_v11 }
 0x1bd   :  { %1412 = vmatpush.bf16.msrb.mxu2 %v3333_v14 }
 0x1c0   :  { %v1113_v0 = vld [vmem:[#allocation1 + $0x1] ss:$9 sm:$0xff]  ;;  %v1115_v5 = vld [vmem:[#allocation1 + $0x3] ss:$9 sm:$0xff] }
 0x1c1   :  { %v1114_v1 = vld [vmem:[#allocation1 + $0x2] ss:$9 sm:$0xff]  ;;  %1413 = vmatpush.bf16.msrb.mxu2 %v3332_v15 }
 0x1c2   :  { %1116 = vst [vmem:[#allocation1] sm:$0xff] %v4027_v23 }
 0x1c3   :  { %1137 = vst [vmem:[#allocation1] ss:$9 sm:$0xff] %v1095_v31  ;;  %v831_v31 = vpop.permute.xlu0 %830 }
 0x1c4   :  { %1145 = vst [vmem:[#allocation1 + $0x4] ss:$9 sm:$0xff] %v1102_v37 }
 0x1c5   :  { %1147 = vst [vmem:[#allocation1 + $0x5] ss:$9 sm:$0xff] %v1103_v38 }
 0x1c6   :  { %1149 = vst [vmem:[#allocation1 + $0x6] ss:$9 sm:$0xff] %v1105_v45 }
 0x1c7   :  { %1151 = vst [vmem:[#allocation1 + $0x7] ss:$9 sm:$0xff] %v1106_v46 }
 0x1c9   :  { %v1117_v26 = vld [vmem:[#allocation1 + $0x1] ss:$9 sm:$0xff]  ;;  %v1119_v58 = vld [vmem:[#allocation1 + $0x3] ss:$9 sm:$0xff] }
 0x1ca   :  { %v1118_v10 = vld [vmem:[#allocation1 + $0x2] ss:$9 sm:$0xff]  ;;  %1139 = vst [vmem:[#allocation1 + $0x1] ss:$9 sm:$0xff] %v1097_v32 }
 0x1cb   :  { %1141 = vst [vmem:[#allocation1 + $0x2] ss:$9 sm:$0xff] %v1099_v33  ;;  %v911_v33 = vpop.permute.xlu1 %910 }
 0x1cc   :  { %1143 = vst [vmem:[#allocation1 + $0x3] ss:$9 sm:$0xff] %v1101_v36 }
 0x1d3   :  { %v1152_v12 = vld [vmem:[#allocation1] sm:$0xff] }
 0x1d4   :  { %1155 = vst [vmem:[#allocation1 + $0x2] ss:$9 sm:$0xff] %v1110_v53 }
 0x1d5   :  { %1156 = vst [vmem:[#allocation1 + $0x3] ss:$9 sm:$0xff] %v1111_v3 }
 0x1d6   :  { %1157 = vst [vmem:[#allocation1 + $0x4] ss:$9 sm:$0xff] %v1113_v0 }
 0x1d7   :  { %1158 = vst [vmem:[#allocation1 + $0x5] ss:$9 sm:$0xff] %v1114_v1 }
 0x1d8   :  { %1153 = vst [vmem:[#allocation1] ss:$9 sm:$0xff] %v1107_v47 }
 0x1d9   :  { %1154 = vst [vmem:[#allocation1 + $0x1] ss:$9 sm:$0xff] %v1109_v39 }
 0x1da   :  { %1159 = vst [vmem:[#allocation1 + $0x6] ss:$9 sm:$0xff] %v1115_v5 }
 0x1db   :  { %1160 = vst [vmem:[#allocation1 + $0x7] ss:$9 sm:$0xff] %v1117_v26 }
 0x1e2   :  { %v1161_v16 = vld [vmem:[#allocation1] sm:$0xff] }
 0x1e3   :  { %v1168_v18 = vpack.c.bf16 %v1161_v16, %v1152_v12  ;;  %1162 = vst [vmem:[#allocation1] ss:$9 sm:$0xff] %v1118_v10 }
 0x1e4   :  { %1163 = vst [vmem:[#allocation1 + $0x1] ss:$9 sm:$0xff] %v1119_v58 }
 0x1e5   :  { %1226 = vmatmul.bf16.vlgmr.msrb.gmra.mxu0 %v1168_v18 }
 0x1eb   :  { %v1164_v61 = vld [vmem:[#allocation1] sm:$0xff] }
 0x1ec   :  { %1325 = vst [vmem:[#allocation1] ss:$9 sm:$0xff] %v3948_v40  ;;  %v1169_v29 = vpack.c.bf16 %v1164_v61, %v1164_v61  ;;  %v3371_v61 = vld [vmem:[%s4517_s5 + $0xb8] sm:$0xff] }
 0x1ed   :  { %1327 = vst [vmem:[#allocation1 + $0x1] ss:$9 sm:$0xff] %v1034_v43  ;;  %v1305_v43 = vrot.slane %v1021_v8, 2  ;;  %1795 = vmatpush.bf16.msra.mxu1 %v3371_v61 }
 0x1ee   :  { %1329 = vst [vmem:[#allocation1 + $0x2] ss:$9 sm:$0xff] %v1035_v44  ;;  %v3342_v44 = vld [vmem:[%s4515_s3 + $0xd0] sm:$0xff] }
 0x1ef   :  { %1331 = vst [vmem:[#allocation1 + $0x3] ss:$9 sm:$0xff] %v3961_v41  ;;  %1557 = vmatpush.bf16.msrb.mxu3 %v3342_v44 }
 0x1f0   :  { %1333 = vst [vmem:[#allocation1 + $0x4] ss:$9 sm:$0xff] %v1036_v42  ;;  %v1008_v42 = vsel %vm1000_vm4, %v3978_v57, %v831_v31  ;;  %v3356_v31 = vld [vmem:[%s4517_s5 + $0x40] sm:$0xff] }
 0x1f1   :  { %1335 = vst [vmem:[#allocation1 + $0x5] ss:$9 sm:$0xff] %v1037_v55  ;;  %v1016_v55 = vsel %vm129_vm0, %v1008_v42, %v911_v33  ;;  %1796 = vmatpush.bf16.msra.mxu1 %v3370_v28  ;;  %v3382_v33 = vld [vmem:[%s4517_s5 + $0x110] sm:$0xff]  ;;  %v3452_v42 = vld [vmem:[%s4516_s4] ss:$0 sm:$0xff]  ;;  %s3484_s4 = smov [#allocation2]  }
 0x1f2   :  { %1337 = vst [vmem:[#allocation1 + $0x6] ss:$9 sm:$0xff] %v1021_v8  ;;  %v1025_v57 = vsel %vm1017_vm5, %v1016_v55, %v991_v35  ;;  %v3381_v55 = vld [vmem:[%s4517_s5 + $0x108] sm:$0xff]  ;;  %s2570_s30 = sshll.u32 %s3484_s4, 4  ;;  %s2571_s30 = int_to_ptr.vmem [resolvable:$true] %s2570_s30 }
 0x1f3   :  { %1339 = vst [vmem:[#allocation1 + $0x7] ss:$9 sm:$0xff] %v1304_v17  ;;  %1558 = vmatpush.bf16.msrb.mxu3 %v3341_v60  ;;  %v1307_v36 = vrot.slane %v1025_v57, 2  ;;  %v3369_v17 = vld [vmem:[%s4517_s5 + $0xa8] sm:$0xff] }
 0x1f5   :  { %1231 = vmatmul.bf16.gmra.mxu0 %v1169_v29  ;;  %v3357_v29 = vld [vmem:[%s4517_s5 + $0x48] sm:$0xff]  ;;  %1797 = vmatpush.bf16.msra.mxu1 %v3369_v17 }
 0x1fa   :  { %v1340_v32 = vld [vmem:[#allocation1] sm:$0xff] }
 0x1fb   :  { %1341 = vst [vmem:[#allocation1] ss:$9 sm:$0xff] %v1305_v43  ;;  %v3368_v43 = vld [vmem:[%s4517_s5 + $0xa0] sm:$0xff] }
 0x1fc   :  { %1342 = vst [vmem:[#allocation1 + $0x1] ss:$9 sm:$0xff] %v4014_v4  ;;  %1798 = vmatpush.bf16.msra.mxu1 %v3368_v43 }
 0x1fd   :  { %1343 = vst [vmem:[#allocation1 + $0x2] ss:$9 sm:$0xff] %v1040_v19  ;;  %v1306_v19 = vrot.slane %v1025_v57, 1 }
 0x1fe   :  { %1344 = vst [vmem:[#allocation1 + $0x3] ss:$9 sm:$0xff] %v1041_v20  ;;  %v3340_v20 = vld [vmem:[%s4515_s3 + $0xc0] sm:$0xff] }
 0x1ff   :  { %1345 = vst [vmem:[#allocation1 + $0x4] ss:$9 sm:$0xff] %v4027_v23  ;;  %1559 = vmatpush.bf16.msrb.mxu3 %v3340_v20 }
 0x200   :  { %1346 = vst [vmem:[#allocation1 + $0x5] ss:$9 sm:$0xff] %v1042_v24 }
 0x201   :  { %1347 = vst [vmem:[#allocation1 + $0x6] ss:$9 sm:$0xff] %v1043_v25 }
 0x202   :  { %1348 = vst [vmem:[#allocation1 + $0x7] ss:$9 sm:$0xff] %v1025_v57 }
 0x203   :  { %1911 = vmatpush.bf16.msra.mxu3 %v3359_v27 }
 0x209   :  { %v1349_v37 = vld [vmem:[#allocation1] sm:$0xff] }
 0x20a   :  { %1350 = vst [vmem:[#allocation1] ss:$9 sm:$0xff] %v1306_v19  ;;  %v1356_v38 = vpack.c.bf16 %v1349_v37, %v1340_v32  ;;  %v3383_v32 = vld [vmem:[%s4517_s5 + $0x118] sm:$0xff] }
 0x20b   :  { %1351 = vst [vmem:[#allocation1 + $0x1] ss:$9 sm:$0xff] %v1307_v36  ;;  %v1293_v24 = vpop.f32.mrf.mxu1  ;;  %2066 = vmatpush.bf16.msrb.mxu1 %v3383_v32  ;;  %v3354_v32 = vld [vmem:[%s4517_s5 + $0x30] sm:$0xff] }
 0x20c   :  { %1414 = vmatmul.bf16.vlgmr.msrb.gmra.mxu2 %v1356_v38  ;;  %v3367_v38 = vld [vmem:[%s4517_s5 + $0x98] sm:$0xff] }
 0x20d   :  { %1778 = vmatpush.bf16.msra.mxu0 %v3367_v38  ;;  %v3377_v38 = vld [vmem:[%s4517_s5 + $0xe8] sm:$0xff] }
 0x20f   :  { %2067 = vmatpush.bf16.msrb.mxu1 %v3382_v33  ;;  %v3362_v33 = vld [vmem:[%s4517_s5 + $0x70] sm:$0xff] }
 0x212   :  { %v1352_v30 = vld [vmem:[#allocation1] sm:$0xff] }
 0x213   :  { %1427 = vst [vmem:[#allocation1] sm:$0xff] %v3948_v40  ;;  %v1295_v49 = vpop.f32.mrf.mxu1  ;;  %v1357_v25 = vpack.c.bf16 %v1352_v30, %v1352_v30  ;;  %2068 = vmatpush.bf16.msrb.mxu1 %v3381_v55  ;;  %v3355_v30 = vld [vmem:[%s4517_s5 + $0x38] sm:$0xff]  ;;  %v3352_v55 = vld [vmem:[%s4517_s5 + $0x20] sm:$0xff] }
 0x214   :  { %1894 = vmatpush.bf16.msra.mxu2 %v3355_v30  ;;  %v3376_v30 = vld [vmem:[%s4517_s5 + $0xe0] sm:$0xff] }
 0x218   :  { %1895 = vmatpush.bf16.msra.mxu2 %v3354_v32 }
 0x21a   :  { %v1429_v45 = vld [vmem:[#allocation1 + $0x1] ss:$9 sm:$0xff]  ;;  %v1433_v47 = vld [vmem:[#allocation1 + $0x3] ss:$9 sm:$0xff] }
 0x21b   :  { %v1431_v46 = vld [vmem:[#allocation1 + $0x2] ss:$9 sm:$0xff]  ;;  %v1298_v51 = vpop.f32.mrf.mxu1 }
 0x21c   :  { %1434 = vst [vmem:[#allocation1] sm:$0xff] %v3961_v41  ;;  %1419 = vmatmul.bf16.gmra.mxu2 %v1357_v25 }
 0x223   :  { %v1435_v52 = vld [vmem:[#allocation1 + $0x1] ss:$9 sm:$0xff]  ;;  %v1437_v53 = vld [vmem:[#allocation1 + $0x3] ss:$9 sm:$0xff]  ;;  %v1300_v3 = vpop.f32.mrf.mxu1 }
 0x224   :  { %v1436_v39 = vld [vmem:[#allocation1 + $0x2] ss:$9 sm:$0xff] }
 0x225   :  { %1438 = vst [vmem:[#allocation1] sm:$0xff] %v1021_v8  ;;  %v3358_v8 = vld [vmem:[%s4517_s5 + $0x50] sm:$0xff] }
 0x226   :  { %1912 = vmatpush.bf16.msra.mxu3 %v3358_v8 }
 0x22a   :  { %1913 = vmatpush.bf16.msra.mxu3 %v3357_v29 }
 0x22c   :  { %v1439_v54 = vld [vmem:[#allocation1 + $0x1] ss:$9 sm:$0xff]  ;;  %v1441_v48 = vld [vmem:[#allocation1 + $0x3] ss:$9 sm:$0xff] }
 0x22d   :  { %v1440_v62 = vld [vmem:[#allocation1 + $0x2] ss:$9 sm:$0xff] }
 0x22e   :  { %1442 = vst [vmem:[#allocation1] sm:$0xff] %v4014_v4  ;;  %1914 = vmatpush.bf16.msra.mxu3 %v3356_v31  ;;  %v3363_v31 = vld [vmem:[%s4517_s5 + $0x78] sm:$0xff] }
 0x235   :  { %v1443_v40 = vld [vmem:[#allocation1 + $0x1] ss:$9 sm:$0xff]  ;;  %v1445_v50 = vld [vmem:[#allocation1 + $0x3] ss:$9 sm:$0xff] }
 0x236   :  { %v1444_v34 = vld [vmem:[#allocation1 + $0x2] ss:$9 sm:$0xff] }
 0x237   :  { %1446 = vst [vmem:[#allocation1] sm:$0xff] %v4027_v23 }
 0x23e   :  { %v1447_v2 = vld [vmem:[#allocation1 + $0x1] ss:$9 sm:$0xff]  ;;  %v1449_v41 = vld [vmem:[#allocation1 + $0x3] ss:$9 sm:$0xff] }
 0x23f   :  { %v1448_v63 = vld [vmem:[#allocation1 + $0x2] ss:$9 sm:$0xff] }
 0x240   :  { %1450 = vst [vmem:[#allocation1] sm:$0xff] %v1025_v57  ;;  %v3380_v57 = vld [vmem:[%s4517_s5 + $0x100] sm:$0xff] }
 0x241   :  { %1471 = vst [vmem:[#allocation1] ss:$9 sm:$0xff] %v1429_v45  ;;  %2069 = vmatpush.bf16.msrb.mxu1 %v3380_v57  ;;  %v3366_v45 = vld [vmem:[%s4517_s5 + $0x90] sm:$0xff]  ;;  %v3379_v57 = vld [vmem:[%s4517_s5 + $0xf8] sm:$0xff] }
 0x242   :  { %1479 = vst [vmem:[#allocation1 + $0x4] ss:$9 sm:$0xff] %v1436_v39  ;;  %1779 = vmatpush.bf16.msra.mxu0 %v3366_v45  ;;  %v3374_v45 = vld [vmem:[%s4517_s5 + $0xd0] sm:$0xff] }
 0x243   :  { %1481 = vst [vmem:[#allocation1 + $0x5] ss:$9 sm:$0xff] %v1437_v53 }
 0x244   :  { %1483 = vst [vmem:[#allocation1 + $0x6] ss:$9 sm:$0xff] %v1439_v54 }
 0x245   :  { %1485 = vst [vmem:[#allocation1 + $0x7] ss:$9 sm:$0xff] %v1440_v62 }
 0x247   :  { %v1451_v0 = vld [vmem:[#allocation1 + $0x1] ss:$9 sm:$0xff]  ;;  %v1453_v5 = vld [vmem:[#allocation1 + $0x3] ss:$9 sm:$0xff] }
 0x248   :  { %v1452_v1 = vld [vmem:[#allocation1 + $0x2] ss:$9 sm:$0xff]  ;;  %1473 = vst [vmem:[#allocation1 + $0x1] ss:$9 sm:$0xff] %v1431_v46 }
 0x249   :  { %1475 = vst [vmem:[#allocation1 + $0x2] ss:$9 sm:$0xff] %v1433_v47 }
 0x24a   :  { %1477 = vst [vmem:[#allocation1 + $0x3] ss:$9 sm:$0xff] %v1435_v52 }
 0x251   :  { %v1486_v4 = vld [vmem:[#allocation1] sm:$0xff] }
 0x252   :  { %1487 = vst [vmem:[#allocation1] ss:$9 sm:$0xff] %v1441_v48 }
 0x253   :  { %1488 = vst [vmem:[#allocation1 + $0x1] ss:$9 sm:$0xff] %v1443_v40 }
 0x254   :  { %1489 = vst [vmem:[#allocation1 + $0x2] ss:$9 sm:$0xff] %v1444_v34 }
 0x255   :  { %1490 = vst [vmem:[#allocation1 + $0x3] ss:$9 sm:$0xff] %v1445_v50 }
 0x256   :  { %1491 = vst [vmem:[#allocation1 + $0x4] ss:$9 sm:$0xff] %v1447_v2 }
 0x257   :  { %1492 = vst [vmem:[#allocation1 + $0x5] ss:$9 sm:$0xff] %v1448_v63 }
 0x258   :  { %1493 = vst [vmem:[#allocation1 + $0x6] ss:$9 sm:$0xff] %v1449_v41 }
 0x259   :  { %1494 = vst [vmem:[#allocation1 + $0x7] ss:$9 sm:$0xff] %v1451_v0  ;;  %v3365_v0 = vld [vmem:[%s4517_s5 + $0x88] sm:$0xff] }
 0x25a   :  { %1780 = vmatpush.bf16.msra.mxu0 %v3365_v0 }
 0x260   :  { %v1495_v23 = vld [vmem:[#allocation1] sm:$0xff] }
 0x261   :  { %1496 = vst [vmem:[#allocation1] ss:$9 sm:$0xff] %v1452_v1  ;;  %v1502_v6 = vpack.c.bf16 %v1495_v23, %v1486_v4 }
 0x262   :  { %1497 = vst [vmem:[#allocation1 + $0x1] ss:$9 sm:$0xff] %v1453_v5  ;;  %v1227_v7 = vpop.f32.mrf.mxu0 }
 0x263   :  { %1560 = vmatmul.bf16.vlgmr.msrb.gmra.mxu3 %v1502_v6  ;;  %v1294_v12 = vadd.f32 %v1293_v24, %v1227_v7 }
 0x269   :  { %v1498_v9 = vld [vmem:[#allocation1] sm:$0xff] }
 0x26a   :  { %v1229_v26 = vpop.f32.mrf.mxu0  ;;  %v1503_v10 = vpack.c.bf16 %v1498_v9, %v1498_v9 }
 0x26b   :  { %v1296_v15 = vadd.f32 %v1295_v49, %v1229_v26 }
 0x272   :  { %v1232_v58 = vpop.f32.mrf.mxu0 }
 0x273   :  { %1565 = vmatmul.bf16.gmra.mxu3 %v1503_v10  ;;  %v1299_v56 = vadd.f32 %v1298_v51, %v1232_v58 }
 0x27a   :  { %v1234_v11 = vpop.f32.mrf.mxu0 }
 0x28f   :  { %v1415_v13 = vpop.f32.mrf.mxu2 }
 0x290   :  { %v1424_v14 = vadd.f32 %v1415_v13, %v1294_v12  ;;  %v3364_v12 = vld [vmem:[%s4517_s5 + $0x80] sm:$0xff] }
 0x291   :  { %1781 = vmatpush.bf16.msra.mxu0 %v3364_v12 }
 0x295   :  { %1782 = vmatpush.bf16.msra.mxu0 %v3363_v31 }
 0x297   :  { %v1417_v16 = vpop.f32.mrf.mxu2 }
 0x298   :  { %v1425_v18 = vadd.f32 %v1417_v16, %v1296_v15 }
 0x299   :  { %1783 = vmatpush.bf16.msra.mxu0 %v3362_v33  ;;  %v3154_v33 = vld [vmem:[%s4519_s7 + $0x60] sm:$0xf] }
 0x29f   :  { %v1420_v59 = vpop.f32.mrf.mxu2 }
 0x2a0   :  { %v1426_v21 = vadd.f32 %v1420_v59, %v1299_v56 }
 0x2a7   :  { %v1422_v22 = vpop.f32.mrf.mxu2 }
 0x2e6   :  { %v1561_v44 = vpop.f32.mrf.mxu3 }
 0x2e7   :  { %v1570_v35 = vadd.f32 %v1561_v44, %v1424_v14  ;;  %v3353_v44 = vld [vmem:[%s4517_s5 + $0x28] sm:$0xff] }
 0x2e8   :  { %1896 = vmatpush.bf16.msra.mxu2 %v3353_v44  ;;  %v3398_v44 = vld [vmem:[%s4519_s7 + $0x6c] sm:$0xf0] }
 0x2e9   :  { %v1577_v60 = vadd.f32 %v3452_v42, %v1570_v35  ;;  %v3360_v35 = vld [vmem:[%s4517_s5 + $0x60] sm:$0xff] }
 0x2eb   :  { %v4184_v19 = vmax.f32 %v1577_v60, 0.0  ;;  %v3351_v60 = vld [vmem:[%s4517_s5 + $0x18] sm:$0xff] }
 0x2ec   :  { %1897 = vmatpush.bf16.msra.mxu2 %v3352_v55  ;;  %v3155_v55 = vor.u32 %v3398_v44, %v3154_v33  ;;  %v3453_v44 = vld [vmem:[%s4518_s6] ss:$0 sm:$0xff] }
 0x2ed   :  { %v1589_v24 = vrot.slane %v4184_v19, 4  ;;  %v1586_v25 = vrot.slane %v4184_v19, 1  ;;  %v1590_v46 = vrot.slane %v4184_v19, 5  ;;  %v1587_v47 = vrot.slane %v4184_v19, 2 }
 0x2ee   :  { %v1563_v20 = vpop.f32.mrf.mxu3  ;;  %v1592_v23 = vrot.slane %v4184_v19, 7 }
 0x2ef   :  { %v1571_v36 = vadd.f32 %v1563_v20, %v1425_v18  ;;  %v1649_v3 = vperm.slane %v1589_v24, 0  ;;  %v1611_v40 = vperm.slane %v1586_v25, 0  ;;  %v1685_v50 = vpack.c.bf16 %v1590_v46, %v1590_v46  ;;  %v3350_v20 = vld [vmem:[%s4517_s5 + $0x10] sm:$0xff]  ;;  %v3348_v24 = vld [vmem:[%s4517_s5] sm:$0xff]  ;;  %v3375_v25 = vld [vmem:[%s4517_s5 + $0xd8] sm:$0xff] }
 0x2f0   :  { %v1646_v63 = vpack.c.bf16 %v1587_v47, %v1587_v47  ;;  %v1920_v15 = vperm.slane %v1592_v23, 0  ;;  %1898 = vmatpush.bf16.msra.mxu2 %v3351_v60  ;;  %v3373_v46 = vld [vmem:[%s4517_s5 + $0xc8] sm:$0xff]  ;;  %v3372_v47 = vld [vmem:[%s4517_s5 + $0xc0] sm:$0xff] }
 0x2f1   :  { %v1578_v37 = vadd.f32 %v3452_v42, %v1571_v36  ;;  %v1693_v26 = vunpack.c.l.b16 %v1685_v50  ;;  %v3378_v36 = vld [vmem:[%s4517_s5 + $0xf0] sm:$0xff]  ;;  %v3162_v60 = vld [vmem:[%s4519_s7 + $0x68] sm:$0xf] }
 0x2f2   :  { %v1809_v58 = vunpack.c.l.b16 %v1646_v63 }
 0x2f3   :  { %v4193_v49 = vmax.f32 %v1578_v37, 0.0  ;;  %v3349_v37 = vld [vmem:[%s4517_s5 + $0x8] sm:$0xff] }
 0x2f4   :  { %1899 = vmatpush.bf16.msra.mxu2 %v3350_v20 }
 0x2f5   :  { %v1597_v51 = vrot.slane %v4193_v49, 5  ;;  %v1594_v52 = vrot.slane %v4193_v49, 2  ;;  %v1598_v39 = vrot.slane %v4193_v49, 6  ;;  %v1595_v54 = vrot.slane %v4193_v49, 3 }
 0x2f6   :  { %v1566_v53 = vpop.f32.mrf.mxu3  ;;  %v1956_v16 = vpack.c.bf16 %v4193_v49, %v4193_v49 }
 0x2f7   :  { %v1572_v62 = vadd.f32 %v1566_v53, %v1426_v21  ;;  %v1650_v48 = vperm.slane %v1597_v51, 0  ;;  %v1612_v34 = vperm.slane %v1594_v52, 0  ;;  %v1687_v2 = vpack.c.bf16 %v1598_v39, %v1598_v39 }
 0x2f8   :  { %v1648_v41 = vpack.c.bf16 %v1595_v54, %v1595_v54  ;;  %v1964_v8 = vunpack.c.l.b16 %v1956_v16  ;;  %1900 = vmatpush.bf16.msra.mxu2 %v3349_v37  ;;  %v1588_v51 = vrot.slane %v4184_v19, 3  ;;  %v1596_v39 = vrot.slane %v4193_v49, 4  ;;  %v3138_v37 = vld [vmem:[%s4519_s7 + $0x40] sm:$0xf] }
 0x2f9   :  { %v1579_v1 = vadd.f32 %v3452_v42, %v1572_v62  ;;  %v3436_v5 = vpack.i.bf16 %v1649_v3, %v1650_v48  ;;  %v3441_v4 = vpack.i.bf16 %v1611_v40, %v1612_v34  ;;  %v1695_v6 = vunpack.c.l.b16 %v1687_v2  ;;  %v3361_v42 = vld [vmem:[%s4517_s5 + $0x68] sm:$0xff] }
 0x2fa   :  { %v1811_v7 = vunpack.c.l.b16 %v1648_v41  ;;  %1784 = vmatpush.bf16.msra.mxu0 %v3361_v42  ;;  %v1593_v3 = vrot.slane %v4193_v49, 1  ;;  %v3396_v42 = vld [vmem:[%s4519_s7 + $0x64] sm:$0xf] }
 0x2fb   :  { %v1582_v9 = vmax.f32 %v1579_v1, 0.0  ;;  %3437 = vrot.lane.b32.xlu0 %v3436_v5, %s3482_s23  ;;  %3442 = vrot.lane.b32.xlu1 %v3441_v4, %s3482_s23  ;;  %v1698_v10 = vrot.slane %v1695_v6, 7 }
 0x2fc   :  { %v1814_v11 = vrot.slane %v1811_v7, 7  ;;  %1901 = vmatpush.bf16.msra.mxu2 %v3348_v24  ;;  %v3392_v24 = vld [vmem:[%s4519_s7 + $0x44] sm:$0xf] }
 0x2fd   :  { %v1600_v13 = vrot.slane %v1582_v9, 1  ;;  %v1921_v14 = vperm.slane %v1582_v9, 0  ;;  %v1699_v56 = vsel %vm725_vm1, %v1698_v10, %v1693_v26  ;;  %v1599_v9 = vrot.slane %v4193_v49, 7 }
 0x2fe   :  { %v1568_v18 = vpop.f32.mrf.mxu3  ;;  %v1815_v59 = vsel %vm725_vm1, %v1814_v11, %v1809_v58  ;;  %v1701_v22 = vpack.c.b16 %v1699_v56, %v1699_v56  ;;  %1785 = vmatpush.bf16.msra.mxu0 %v3360_v35  ;;  %v3156_v35 = vld [vmem:[%s4519_s7 + $0x70] sm:$0xf0] }
 0x2ff   :  { %v1958_v21 = vpack.c.bf16 %v1600_v13, %v1600_v13  ;;  %v1817_v61 = vpack.c.b16 %v1815_v59, %v1815_v59  ;;  %v3446_v27 = vpack.i.bf16 %v1920_v15, %v1921_v14  ;;  %v1591_v59 = vrot.slane %v4184_v19, 6 }
 0x300   :  { %2981 = vmatmul.msk.bf16.vlgmr.msra.gmra.mxu1 %vm129_vm0, %v1701_v22  ;;  %v3159_v20 = vor.u32 %v3396_v42, %v3156_v35  ;;  %2196 = vmatpush.bf16.msrb.mxu2 %v3155_v55  ;;  %v3421_v42 = vld [vmem:[%s4521_s9 + $0xa8] sm:$0xff] }
 0x301   :  { %v1966_v28 = vunpack.c.l.b16 %v1958_v21  ;;  %3030 = vmatmul.msk.bf16.vlgmr.msra.gmra.mxu3 %vm129_vm0, %v1817_v61  ;;  %3447 = vrot.lane.b32.xlu2 %v3446_v27, %s3482_s23  ;;  %v3405_v55 = vld [vmem:[%s4521_s9 + $0x28] sm:$0xff] }
 0x302   :  { %2049 = vmatpush.bf16.msrb.mxu0 %v3379_v57  ;;  %v3399_v57 = vld [vmem:[%s4519_s7 + $0x74] sm:$0xf0]  ;;  %2209 = vmatpush.bf16.msrb.mxu3 %v3159_v20  ;;  %v3412_v20 = vld [vmem:[%s4521_s9 + $0x60] sm:$0xff] }
 0x303   :  { %v1969_v17 = vrot.slane %v1966_v28, 7 }
 0x305   :  { %v1970_v29 = vsel %vm725_vm1, %v1969_v17, %v1964_v8 }
 0x306   :  { %v1972_v43 = vpack.c.b16 %v1970_v29, %v1970_v29  ;;  %2050 = vmatpush.bf16.msrb.mxu0 %v3378_v36  ;;  %v3163_v36 = vor.u32 %v3399_v57, %v3162_v60  ;;  %v3420_v60 = vld [vmem:[%s4521_s9 + $0xa0] sm:$0xff] }
 0x307   :  { %v3404_v57 = vld [vmem:[%s4521_s9 + $0x20] sm:$0xff] }
 0x308   :  { %2222 = vmatpush.bf16.msra.mxu1 %v3163_v36 }
 0x30a   :  { %2051 = vmatpush.bf16.msrb.mxu0 %v3377_v38  ;;  %v3394_v38 = vld [vmem:[%s4519_s7 + $0x4c] sm:$0xf0] }
 0x30e   :  { %2052 = vmatpush.bf16.msrb.mxu0 %v3376_v30  ;;  %v3139_v30 = vor.u32 %v3394_v38, %v3138_v37  ;;  %v3431_v38 = vld [vmem:[%s4521_s9 + $0xf8] sm:$0xff] }
 0x310   :  { %3103 = vmatmul.msk.bf16.vlgmr.msrb.gmra.mxu1 %vm129_vm0, %v1972_v43  ;;  %2197 = vmatpush.bf16.msrb.mxu2 %v3139_v30  ;;  %v3419_v30 = vld [vmem:[%s4521_s9 + $0x98] sm:$0xff] }
 0x312   :  { %2053 = vmatpush.bf16.msrb.mxu0 %v3375_v25  ;;  %v3140_v25 = vld [vmem:[%s4519_s7 + $0x50] sm:$0xf0] }
 0x316   :  { %2054 = vmatpush.bf16.msrb.mxu0 %v3374_v45  ;;  %v3146_v45 = vld [vmem:[%s4519_s7 + $0x48] sm:$0xf] }
 0x31a   :  { %2055 = vmatpush.bf16.msrb.mxu0 %v3373_v46  ;;  %v3395_v46 = vld [vmem:[%s4519_s7 + $0x54] sm:$0xf0] }
 0x31e   :  { %2056 = vmatpush.bf16.msrb.mxu0 %v3372_v47  ;;  %v3143_v47 = vor.u32 %v3392_v24, %v3140_v25  ;;  %v3403_v25 = vld [vmem:[%s4521_s9 + $0x18] sm:$0xff] }
 0x320   :  { %2210 = vmatpush.bf16.msrb.mxu3 %v3143_v47  ;;  %v3417_v47 = vld [vmem:[%s4521_s9 + $0x88] sm:$0xff] }
 0x35b   :  { %v3448_v34 = vpop.permute.xlu2 %3447 }
 0x35c   :  { %v3449_v23 = vunpack.i.l.bf16 %v3448_v34  ;;  %v3450_v15 = vunpack.i.h.bf16 %v3448_v34 }
 0x35e   :  { %v1929_v12 = vsel %vm129_vm0, %v1599_v9, %v3449_v23  ;;  %v1928_v49 = vsel %vm129_vm0, %v1591_v59, %v3450_v15  ;;  %v3385_v15 = vld [vmem:[%s4519_s7 + $0xc] sm:$0xf] }
 0x35f   :  { %v1957_v56 = vpack.c.bf16 %v1929_v12, %v1929_v12  ;;  %v1955_v61 = vpack.c.bf16 %v1928_v49, %v1928_v49  ;;  %v3132_v12 = vld [vmem:[%s4519_s7 + $0x38] sm:$0xf0] }
 0x361   :  { %v1965_v21 = vunpack.c.l.b16 %v1957_v56  ;;  %v1963_v28 = vunpack.c.l.b16 %v1955_v61  ;;  %v3407_v61 = vld [vmem:[%s4521_s9 + $0x38] sm:$0xff] }
 0x363   :  { %v1967_v27 = vrot.slane %v1965_v21, 7  ;;  %v3423_v21 = vld [vmem:[%s4521_s9 + $0xb8] sm:$0xff] }
 0x365   :  { %v1968_v17 = vsel %vm725_vm1, %v1967_v27, %v1963_v28  ;;  %v3415_v27 = vld [vmem:[%s4521_s9 + $0x78] sm:$0xff] }
 0x366   :  { %v1971_v43 = vpack.c.b16 %v1968_v17, %v1968_v17  ;;  %v3422_v17 = vld [vmem:[%s4521_s9 + $0xb0] sm:$0xff] }
 0x36d   :  { %v3438_v52 = vpop.permute.xlu0 %3437  ;;  %v3443_v53 = vpop.permute.xlu1 %3442 }
 0x36e   :  { %v3440_v54 = vunpack.i.h.bf16 %v3438_v52  ;;  %v3439_v62 = vunpack.i.l.bf16 %v3438_v52  ;;  %v3445_v48 = vunpack.i.h.bf16 %v3443_v53  ;;  %v3444_v40 = vunpack.i.l.bf16 %v3443_v53  ;;  %v3122_v52 = vld [vmem:[%s4519_s7 + $0x20] sm:$0xf]  ;;  %v3388_v53 = vld [vmem:[%s4519_s7 + $0x24] sm:$0xf] }
 0x370   :  { %v1657_v50 = vsel %vm129_vm0, %v1588_v51, %v3440_v54  ;;  %v1658_v2 = vsel %vm129_vm0, %v1596_v39, %v3439_v62  ;;  %v1619_v63 = vsel %vm129_vm0, %v4184_v19, %v3445_v48  ;;  %v1620_v41 = vsel %vm129_vm0, %v1593_v3, %v3444_v40  ;;  %v3390_v39 = vld [vmem:[%s4519_s7 + $0x2c] sm:$0xf0]  ;;  %v3124_v54 = vld [vmem:[%s4519_s7 + $0x30] sm:$0xf0]  ;;  %v3130_v62 = vld [vmem:[%s4519_s7 + $0x28] sm:$0xf] }
 0x371   :  { %v1684_v0 = vpack.c.bf16 %v1657_v50, %v1657_v50  ;;  %v1686_v1 = vpack.c.bf16 %v1658_v2, %v1658_v2  ;;  %v1645_v5 = vpack.c.bf16 %v1619_v63, %v1619_v63  ;;  %v1647_v4 = vpack.c.bf16 %v1620_v41, %v1620_v41  ;;  %v3391_v40 = vld [vmem:[%s4519_s7 + $0x34] sm:$0xf0]  ;;  %v3106_v50 = vld [vmem:[%s4519_s7] sm:$0xf]  ;;  %v3386_v2 = vld [vmem:[%s4519_s7 + $0xc] sm:$0xf0] }
 0x372   :  { %v3147_v51 = vor.u32 %v3395_v46, %v3146_v45  ;;  %v3123_v3 = vor.u32 %v3390_v39, %v3122_v52  ;;  %v3127_v48 = vor.u32 %v3388_v53, %v3124_v54  ;;  %v3131_v34 = vor.u32 %v3391_v40, %v3130_v62  ;;  %v3384_v63 = vld [vmem:[%s4519_s7 + $0x4] sm:$0xf]  ;;  %v3411_v45 = vld [vmem:[%s4521_s9 + $0x58] sm:$0xff]  ;;  %v3418_v46 = vld [vmem:[%s4521_s9 + $0x90] sm:$0xff] }
 0x373   :  { %v1694_v6 = vunpack.c.l.b16 %v1686_v1  ;;  %v1810_v7 = vunpack.c.l.b16 %v1647_v4  ;;  %v1692_v26 = vunpack.c.l.b16 %v1684_v0  ;;  %v1808_v58 = vunpack.c.l.b16 %v1645_v5  ;;  %v3108_v0 = vld [vmem:[%s4519_s7 + $0x10] sm:$0xf0]  ;;  %v3114_v1 = vld [vmem:[%s4519_s7 + $0x8] sm:$0xf]  ;;  %v3387_v5 = vld [vmem:[%s4519_s7 + $0x14] sm:$0xf0] }
 0x374   :  { %2223 = vmatpush.bf16.msra.mxu1 %v3147_v51  ;;  %2198 = vmatpush.bf16.msrb.mxu2 %v3123_v3  ;;  %v3107_v41 = vor.u32 %v3386_v2, %v3106_v50  ;;  %v3111_v4 = vor.u32 %v3384_v63, %v3108_v0  ;;  %v3115_v23 = vor.u32 %v3387_v5, %v3114_v1  ;;  %v3402_v51 = vld [vmem:[%s4521_s9 + $0x10] sm:$0xff]  ;;  %v3416_v53 = vld [vmem:[%s4521_s9 + $0x80] sm:$0xff]  ;;  %v3401_v3 = vld [vmem:[%s4521_s9 + $0x8] sm:$0xff] }
 0x375   :  { %v1696_v10 = vrot.slane %v1694_v6, 7  ;;  %v1812_v11 = vrot.slane %v1810_v7, 7  ;;  %2211 = vmatpush.bf16.msrb.mxu3 %v3127_v48  ;;  %v3397_v6 = vld [vmem:[%s4519_s7 + $0x6c] sm:$0xf]  ;;  %v3164_v7 = vld [vmem:[%s4519_s7 + $0x78] sm:$0xf0] }
 0x376   :  { %v3167_v9 = vor.u32 %v3397_v6, %v3164_v7  ;;  %v3410_v52 = vld [vmem:[%s4521_s9 + $0x50] sm:$0xff]  ;;  %v3409_v54 = vld [vmem:[%s4521_s9 + $0x48] sm:$0xff]  ;;  %v3400_v48 = vld [vmem:[%s4521_s9] sm:$0xff] }
 0x377   :  { %v1697_v13 = vsel %vm725_vm1, %v1696_v10, %v1692_v26  ;;  %v1813_v14 = vsel %vm725_vm1, %v1812_v11, %v1808_v58  ;;  %v3393_v26 = vld [vmem:[%s4519_s7 + $0x4c] sm:$0xf]  ;;  %v3148_v10 = vld [vmem:[%s4519_s7 + $0x58] sm:$0xf0]  ;;  %v3430_v39 = vld [vmem:[%s4521_s9 + $0xf0] sm:$0xff] }
 0x378   :  { %v1700_v16 = vpack.c.b16 %v1697_v13, %v1697_v13  ;;  %v1816_v18 = vpack.c.b16 %v1813_v14, %v1813_v14  ;;  %2224 = vmatpush.bf16.msra.mxu1 %v3131_v34  ;;  %2199 = vmatpush.bf16.msrb.mxu2 %v3107_v41  ;;  %v3151_v58 = vor.u32 %v3393_v26, %v3148_v10  ;;  %v3389_v11 = vld [vmem:[%s4519_s7 + $0x2c] sm:$0xf]  ;;  %v3408_v40 = vld [vmem:[%s4521_s9 + $0x40] sm:$0xff]  ;;  %v3427_v50 = vld [vmem:[%s4521_s9 + $0xd8] sm:$0xff] }
 0x379   :  { %2212 = vmatpush.bf16.msrb.mxu3 %v3111_v4  ;;  %v3135_v14 = vor.u32 %v3389_v11, %v3132_v12  ;;  %v3429_v62 = vld [vmem:[%s4521_s9 + $0xe8] sm:$0xff]  ;;  %v3428_v34 = vld [vmem:[%s4521_s9 + $0xe0] sm:$0xff]  ;;  %v3426_v2 = vld [vmem:[%s4521_s9 + $0xd0] sm:$0xff] }
 0x37a   :  { %1786 = vmatmul.bf16.vlgmr.msra.gmra.mxu0 %v1700_v16  ;;  %1902 = vmatmul.bf16.vlgmr.msra.gmra.mxu2 %v1816_v18  ;;  %v3116_v16 = vld [vmem:[%s4519_s7 + $0x18] sm:$0xf0]  ;;  %v3425_v63 = vld [vmem:[%s4521_s9 + $0xc8] sm:$0xff]  ;;  %v3424_v41 = vld [vmem:[%s4521_s9 + $0xc0] sm:$0xff] }
 0x37b   :  { %v3119_v18 = vor.u32 %v3385_v15, %v3116_v16  ;;  %2525 = vmatpush.bf16.msra.mxu0 %v3415_v27  ;;  %v2099_v0 = vld [vmem:[%s4520_s8] sm:$0xf] }
 0x37c   :  { %2225 = vmatpush.bf16.msra.mxu1 %v3115_v23  ;;  %2235 = vmatpush.bf16.msra.mxu2 %v3167_v9  ;;  %v2103_v1 = vperm.slane %v2099_v0, 2  ;;  %v2101_v23 = vperm.slane %v2099_v0, 0  ;;  %v2102_v6 = vperm.slane %v2099_v0, 1 }
 0x37d   :  { %v4294_v22 = vpop.f32.mrf.mxu1  ;;  %2512 = vmatpush.bf16.msra.mxu3 %v3407_v61 }
 0x380   :  { %2236 = vmatpush.bf16.msra.mxu2 %v3151_v58  ;;  %2538 = vmatpush.bf16.msrb.mxu1 %v3423_v21 }
 0x384   :  { %v4296_v8 = vpop.f32.mrf.mxu3  ;;  %2237 = vmatpush.bf16.msra.mxu2 %v3135_v14  ;;  %2539 = vmatpush.bf16.msrb.mxu1 %v3422_v17 }
 0x385   :  { %v1802_v29 = vpop.f32.mrf.mxu1 }
 0x388   :  { %2238 = vmatpush.bf16.msra.mxu2 %v3119_v18  ;;  %2540 = vmatpush.bf16.msrb.mxu1 %v3421_v42 }
 0x38a   :  { %2057 = vmatmul.bf16.vlgmr.msrb.gmra.mxu0 %v1971_v43  ;;  %v3414_v43 = vld [vmem:[%s4521_s9 + $0x70] sm:$0xff] }
 0x38b   :  { %2526 = vmatpush.bf16.msra.mxu0 %v3414_v43 }
 0x38c   :  { %v1918_v31 = vpop.f32.mrf.mxu3  ;;  %2541 = vmatpush.bf16.msrb.mxu1 %v3420_v60 }
 0x38d   :  { %v4299_v32 = vpop.f32.mrf.mxu1 }
 0x390   :  { %2542 = vmatpush.bf16.msrb.mxu1 %v3419_v30 }
 0x394   :  { %2543 = vmatpush.bf16.msrb.mxu1 %v3418_v46 }
 0x395   :  { %v2073_v19 = vpop.f32.mrf.mxu1 }
 0x398   :  { %2544 = vmatpush.bf16.msrb.mxu1 %v3417_v47 }
 0x39c   :  { %2545 = vmatpush.bf16.msrb.mxu1 %v3416_v53 }
 0x3f7   :  { %v1787_v13 = vpop.f32.mrf.mxu0 }
 0x3f8   :  { %v1801_v49 = vadd.f32 %v4294_v22, %v1787_v13  ;;  %v3406_v22 = vld [vmem:[%s4521_s9 + $0x30] sm:$0xff] }
 0x3f9   :  { %2513 = vmatpush.bf16.msra.mxu3 %v3406_v22 }
 0x3fd   :  { %v1903_v56 = vpop.f32.mrf.mxu2  ;;  %2514 = vmatpush.bf16.msra.mxu3 %v3405_v55 }
 0x3fe   :  { %v1904_v28 = vadd.f32 %v1903_v56, %v1801_v49 }
 0x3ff   :  { %v1789_v59 = vpop.f32.mrf.mxu0 }
 0x400   :  { %v1917_v19 = vadd.f32 %v4296_v8, %v1904_v28  ;;  %v3413_v8 = vld [vmem:[%s4521_s9 + $0x68] sm:$0xff]  ;;  %v2104_v59 = vperm.slane %v2099_v0, 3 }
 0x401   :  { %2527 = vmatpush.bf16.msra.mxu0 %v3413_v8  ;;  %2515 = vmatpush.bf16.msra.mxu3 %v3404_v57 }
 0x405   :  { %v1905_v29 = vpop.f32.mrf.mxu2  ;;  %2528 = vmatpush.bf16.msra.mxu0 %v3412_v20  ;;  %2516 = vmatpush.bf16.msra.mxu3 %v3403_v25 }
 0x407   :  { %v2058_v31 = vpop.f32.mrf.mxu0 }
 0x408   :  { %v2072_v33 = vadd.f32 %v4299_v32, %v2058_v31 }
 0x409   :  { %2529 = vmatpush.bf16.msra.mxu0 %v3411_v45  ;;  %2517 = vmatpush.bf16.msra.mxu3 %v3402_v51 }
 0x40a   :  { %v2075_v32 = vadd.f32 %v2072_v33, %v1917_v19  ;;  %v3454_v19 = vld [vmem:[%s4522_s10] ss:$0 sm:$0xff] }
 0x40c   :  { %v2080_v35 = vadd.f32 %v3453_v44, %v2075_v32 }
 0x40d   :  { %2530 = vmatpush.bf16.msra.mxu0 %v3410_v52  ;;  %2518 = vmatpush.bf16.msra.mxu3 %v3401_v3 }
 0x40e   :  { %v2081_v36 = vmax.f32 %v2080_v35, 0.0 }
 0x40f   :  { %v2060_v37 = vpop.f32.mrf.mxu0 }
 0x410   :  { %v2098_v24 = vpack.c.bf16 %v2081_v36, %v2081_v36 }
 0x411   :  { %2531 = vmatpush.bf16.msra.mxu0 %v3409_v54  ;;  %2519 = vmatpush.bf16.msra.mxu3 %v3400_v48 }
 0x412   :  { %3168 = vmatmul.msk.bf16.vlgmr.msrb.gmra.mxu2 %vm129_vm0, %v2098_v24  ;;  %3169 = vmatmul.msk.bf16.vlgmr.msrb.gmra.mxu3 %vm129_vm0, %v2098_v24 }
 0x413   :  { %3170 = vmatmul.msk.bf16.vlgmr.msra.gmra.mxu1 %vm129_vm0, %v2098_v24  ;;  %2551 = vmatpush.bf16.msrb.mxu2 %v3431_v38 }
 0x415   :  { %2532 = vmatpush.bf16.msra.mxu0 %v3408_v40 }
 0x417   :  { %2552 = vmatpush.bf16.msrb.mxu2 %v3430_v39 }
 0x41b   :  { %2553 = vmatpush.bf16.msrb.mxu2 %v3429_v62 }
 0x41f   :  { %2554 = vmatpush.bf16.msrb.mxu2 %v3428_v34 }
 0x422   :  { %3171 = vmatmul.msk.bf16.vlgmr.msra.gmra.mxu2 %vm129_vm0, %v2098_v24 }
 0x423   :  { %2555 = vmatpush.bf16.msrb.mxu2 %v3427_v50 }
 0x427   :  { %2556 = vmatpush.bf16.msrb.mxu2 %v3426_v2 }
 0x42b   :  { %2557 = vmatpush.bf16.msrb.mxu2 %v3425_v63 }
 0x42f   :  { %2558 = vmatpush.bf16.msrb.mxu2 %v3424_v41 }
 0x490   :  { %v2227_v5 = vpop.f32.mrf.mxu1 }
 0x491   :  { %v2228_v4 = vadd.f32 %v2227_v5, %v2103_v1 }
 0x493   :  { %v2246_v7 = vmax.f32 %v2228_v4, 0.0 }
 0x495   :  { %v2314_v9 = vpack.c.bf16 %v2246_v7, %v2246_v7  ;;  %v2201_v26 = vpop.f32.mrf.mxu2  ;;  %v2214_v10 = vpop.f32.mrf.mxu3 }
 0x496   :  { %v2202_v58 = vadd.f32 %v2201_v26, %v2101_v23  ;;  %v2215_v11 = vadd.f32 %v2214_v10, %v2102_v6 }
 0x497   :  { %2546 = vmatmul.bf16.vlgmr.msrb.gmra.mxu1 %v2314_v9 }
 0x498   :  { %v2244_v12 = vmax.f32 %v2202_v58, 0.0  ;;  %v2245_v13 = vmax.f32 %v2215_v11, 0.0  ;;  %v2229_v14 = vpop.f32.mrf.mxu1 }
 0x49a   :  { %v2312_v15 = vpack.c.bf16 %v2244_v12, %v2244_v12  ;;  %v2313_v16 = vpack.c.bf16 %v2245_v13, %v2245_v13 }
 0x49c   :  { %2520 = vmatmul.bf16.vlgmr.msra.gmra.mxu3 %v2312_v15  ;;  %2533 = vmatmul.bf16.vlgmr.msra.gmra.mxu0 %v2313_v16 }
 0x49d   :  { %v2203_v18 = vpop.f32.mrf.mxu2  ;;  %v2216_v56 = vpop.f32.mrf.mxu3 }
 0x4a5   :  { %v2240_v49 = vpop.f32.mrf.mxu2 }
 0x4a6   :  { %v2241_v21 = vadd.f32 %v2240_v49, %v2104_v59 }
 0x4a8   :  { %v2247_v61 = vmax.f32 %v2241_v21, 0.0 }
 0x4aa   :  { %v2315_v27 = vpack.c.bf16 %v2247_v61, %v2247_v61 }
 0x4ac   :  { %2559 = vmatmul.bf16.vlgmr.msrb.gmra.mxu2 %v2315_v27 }
 0x4ad   :  { %v2242_v28 = vpop.f32.mrf.mxu2 }
 0x514   :  { %v2547_v17 = vpop.f32.mrf.mxu1 }
 0x519   :  { %v2534_v22 = vpop.f32.mrf.mxu0 }
 0x51c   :  { %v2549_v29 = vpop.f32.mrf.mxu1 }
 0x51f   :  { %v2521_v43 = vpop.f32.mrf.mxu3 }
 0x520   :  { %v2522_v33 = vadd.f32 %v3454_v19, %v2521_v43 }
 0x521   :  { %v2536_v31 = vpop.f32.mrf.mxu0 }
 0x522   :  { %v2535_v42 = vadd.f32 %v2534_v22, %v2522_v33 }
 0x524   :  { %v2548_v55 = vadd.f32 %v2547_v17, %v2535_v42 }
 0x527   :  { %v2523_v44 = vpop.f32.mrf.mxu3 }
 0x52f   :  { %v2560_v8 = vpop.f32.mrf.mxu2 }
 0x530   :  { %v2561_v32 = vadd.f32 %v2560_v8, %v2548_v55 }
 0x532   :  { %2564 = vst [vmem:[#allocation2] sm:$0x3] %v2561_v32 }
 0x533   :  { %2575 = dma.vmem_to_hbm [thread:$0]  %s2571_s30, 32, %s2573_s14, [#allocation3]  }
 0x537   :  { %v2562_v35 = vpop.f32.mrf.mxu2 }
 0x538   :  { %3479 = dma.done.wait [#allocation3], 32  }
 0x539   :  { %3480 = vsyncadd [#allocation3], 4294967264 }
 0x53a   :  { %2580 = vsyncpa [#allocation3], 1 }

</bundles_post_ra>
